<compile_context>
chip_gen: v5e
topology: v5e:2x2
jax: 0.10.0
libtpu: 0.0.40
codegen_flags: <defaults>
</compile_context>

<pallas_src>
import functools

import jax
import jax.numpy as jnp
import numpy as np
from jax.experimental import pallas as pl
from jax.experimental.pallas import tpu as pltpu

FEATURE_DIM = 256
LSTM1_HIDDEN = 128
LSTM2_HIDDEN = 16
BN_EPS = 1e-5


# ----------------------------------------------------------------------------
# Pallas kernel: the whole dense hot path (4 matmul stages + 2 LSTM cells)
# ----------------------------------------------------------------------------
def _og_lstm_kernel(
    eb_ref,      # (TB, K_eb)  bf16  [bssid embeddings | site embedding | 0-pad]
    rssi_ref,    # (TB, K_r)   bf16  raw RSSI features, K 0-padded to 16-mult
    w_rssi_ref,  # (K_r, W*E)  bf16  BN_rssi folded into fc_rssi weight (0-pad rows)
    b_rssi_ref,  # (1, W*E)    f32   folded bias
    w_fbs_ref,   # (K_eb, 256) bf16  fc_features rows for [bssid|site] (BN1 folded)
    w_fr_ref,    # (W*E, 256)  bf16  fc_features rows for rssi_feat (BN1 folded)
    b_f_ref,     # (1, 256)    f32   folded bias
    w_l1_ref,    # (256, 384)  bf16  lstm1 [Wi|Wg|Wo]^T, BN2 folded in
    b_l1_ref,    # (1, 384)    f32   folded (b_ih + b_hh + BN2 shift)
    w_l2_ref,    # (128, 48)   bf16  lstm2 [Wi|Wg|Wo]^T
    b_l2_ref,    # (1, 48)     f32
    w_out_ref,   # (16, 3)     f32
    b_out_ref,   # (1, 3)      f32
    out_ref,     # (TB, 3)     f32
):
    f32 = jnp.float32
    bf16 = jnp.bfloat16

    # --- rssi path: BN_rssi + fc_rssi bias already folded into w/b ---
    r = (jnp.dot(rssi_ref[...], w_rssi_ref[...], preferred_element_type=f32)
         + b_rssi_ref[...])
    r = jnp.maximum(r, 0.0).astype(bf16)   # early bf16: halves VMEM traffic

    # --- fc_features on concat([eb, es, r]) via column-split folded weight.
    #     The site-embedding columns are pre-concatenated into eb / w_fbs. ---
    x = (jnp.dot(eb_ref[...], w_fbs_ref[...], preferred_element_type=f32)
         + jnp.dot(r, w_fr_ref[...], preferred_element_type=f32)
         + b_f_ref[...])
    x = jnp.maximum(x, 0.0).astype(bf16)
    # BatchNorm2 (scalar affine) is folded into w_l1 / b_l1 in the wrapper.

    # --- Single-step LSTM cell, h0 = c0 = 0 (seq_len == 1):
    #     gates = x @ [Wi|Wg|Wo]^T + (b_ih + b_hh);  c = i*g;  h = o*tanh(c).
    #     NOTE: dropping W_hh and the forget gate is exact ONLY because
    #     seq_len == 1 and the initial state is zero. ---
    def lstm_cell(xin_bf16, w_ref, b_ref, hidden):
        g_all = (jnp.dot(xin_bf16, w_ref[...], preferred_element_type=f32)
                 + b_ref[...])
        i = jax.nn.sigmoid(g_all[:, :hidden])
        g = jnp.tanh(g_all[:, hidden:2 * hidden])
        o = jax.nn.sigmoid(g_all[:, 2 * hidden:])
        return o * jnp.tanh(i * g)

    h1 = jnp.maximum(lstm_cell(x, w_l1_ref, b_l1_ref, LSTM1_HIDDEN),
                     0.0).astype(bf16)
    h2 = jnp.maximum(lstm_cell(h1, w_l2_ref, b_l2_ref, LSTM2_HIDDEN), 0.0)

    # fc_output (tiny; masked 3-lane store is negligible at these sizes)
    out_ref[...] = (jnp.dot(h2, w_out_ref[...], preferred_element_type=f32)
                    + b_out_ref[...])


# ----------------------------------------------------------------------------
# Parameter init (deterministic, shapes match the PyTorch module __init__)
# ----------------------------------------------------------------------------
def init_params(key, wifi_num, bssid_dim, site_id_dim, embedding_dim):
    WE = wifi_num * embedding_dim
    feat_dim = 2 * WE + 2
    ks = jax.random.split(key, 26)

    def u(k, shape, scale=0.1):
        return jax.random.uniform(k, shape, jnp.float32, -scale, scale)

    return dict(
        embd_bssid=u(ks[0], (bssid_dim, embedding_dim), 1.0),
        embd_site=u(ks[1], (site_id_dim, 2), 1.0),
        # BatchNorm1d(input_dim) applied BEFORE fc_rssi
        bn_rssi_gamma=1.0 + u(ks[2], (wifi_num,)),
        bn_rssi_beta=u(ks[3], (wifi_num,)),
        bn_rssi_mean=u(ks[4], (wifi_num,)),
        bn_rssi_var=1.0 + u(ks[5], (wifi_num,), 0.5),
        # nn.Linear stores weight as (out, in)
        fc_rssi_w=u(ks[6], (WE, wifi_num)),
        fc_rssi_b=u(ks[7], (WE,)),
        # BatchNorm1d(feature_dim) applied BEFORE fc_features
        bn1_gamma=1.0 + u(ks[8], (feat_dim,)),
        bn1_beta=u(ks[9], (feat_dim,)),
        bn1_mean=u(ks[10], (feat_dim,)),
        bn1_var=1.0 + u(ks[11], (feat_dim,), 0.5),
        fc_feat_w=u(ks[12], (FEATURE_DIM, feat_dim)),
        fc_feat_b=u(ks[13], (FEATURE_DIM,)),
        # BatchNorm1d(1) applied after relu(fc_features) -> scalar affine
        bn2_gamma=1.0 + u(ks[14], (1,)),
        bn2_beta=u(ks[15], (1,)),
        bn2_mean=u(ks[16], (1,)),
        bn2_var=1.0 + u(ks[17], (1,), 0.5),
        # nn.LSTM: weight_ih_l0 (4H, in), biases (4H,); gate order i, f, g, o.
        # W_hh omitted: with seq_len == 1 and h0 == 0 its contribution is 0.
        lstm1_w_ih=u(ks[18], (4 * LSTM1_HIDDEN, 256)),
        lstm1_b_ih=u(ks[19], (4 * LSTM1_HIDDEN,)),
        lstm1_b_hh=u(ks[20], (4 * LSTM1_HIDDEN,)),
        lstm2_w_ih=u(ks[21], (4 * LSTM2_HIDDEN, LSTM1_HIDDEN)),
        lstm2_b_ih=u(ks[22], (4 * LSTM2_HIDDEN,)),
        lstm2_b_hh=u(ks[23], (4 * LSTM2_HIDDEN,)),
        fc_out_w=u(ks[24], (3, LSTM2_HIDDEN)),
        fc_out_b=u(ks[25], (3,)),
    )


def _round_up(n, m):
    return ((n + m - 1) // m) * m


def _pad_rows(a, n):
    if a.shape[0] == n:
        return a
    return jnp.pad(a, ((0, n - a.shape[0]), (0, 0)))


def _pick_tb(batch):
    """Batch tile: big enough to amortize the ~0.35us/grid-step overhead,
    small enough to bound padding waste, and (when the batch allows it) at
    least 2 tiles so the 'parallel' batch axis can shard across v7x's two
    TensorCores."""
    b8 = _round_up(batch, 8)
    if b8 <= 128:                       # tiny batch: one tile, no padding games
        return b8
    for tb in (512, 256, 128, 64):
        b_pad = _round_up(b8, tb)
        two_tiles = (b_pad // tb) >= 2
        low_waste = (b_pad - batch) <= max(64, batch // 3)
        if two_tiles and low_waste:
            return tb
    return 64


# ----------------------------------------------------------------------------
# Wrapper: gathers + trace-time BN/bias folding, then one pallas_call
# ----------------------------------------------------------------------------
@functools.partial(jax.jit, static_argnames=("wifi_num", "embedding_dim"))
def og_lstm_forward(params, bssid_feats, site_id, rssi_feats,
                    *, wifi_num, embedding_dim):
    B = rssi_feats.shape[0]
    WE = wifi_num * embedding_dim
    K_eb = _round_up(WE + 2, 16)            # [bssid | site | zero-pad]
    K_r = _round_up(wifi_num, 16)           # rssi K padded for aligned sub-tile
    bf16 = jnp.bfloat16

    # Embedding lookups (gather) -- plain-JAX glue outside the kernel.
    # Tables cast to bf16 BEFORE the gather so the gather output is bf16.
    eb = jnp.take(params["embd_bssid"].astype(bf16), bssid_feats,
                  axis=0).reshape(B, WE)
    es = jnp.take(params["embd_site"].astype(bf16), site_id, axis=0)  # (B, 2)
    eb_es = jnp.concatenate([eb, es], axis=-1)
    eb_es = jnp.pad(eb_es, ((0, 0), (0, K_eb - (WE + 2))))

    # --- Fold BN_rssi (pre-Linear) + fc_rssi bias into one weight/bias ---
    a_r = params["bn_rssi_gamma"] * jax.lax.rsqrt(params["bn_rssi_var"] + BN_EPS)
    c_r = params["bn_rssi_beta"] - params["bn_rssi_mean"] * a_r
    wrT = params["fc_rssi_w"].T                                   # (W, WE)
    w_rssi = jnp.pad(a_r[:, None] * wrT,
                     ((0, K_r - wifi_num), (0, 0))).astype(bf16)  # (K_r, WE)
    b_rssi = (params["fc_rssi_b"] + c_r @ wrT).reshape(1, WE)

    # --- Fold BN1 (pre-Linear) + fc_features bias, split by input block ---
    a_1 = params["bn1_gamma"] * jax.lax.rsqrt(params["bn1_var"] + BN_EPS)
    c_1 = params["bn1_beta"] - params["bn1_mean"] * a_1
    wfT = params["fc_feat_w"].T                                   # (feat_dim, 256)
    wf = a_1[:, None] * wfT
    b_f = (params["fc_feat_b"] + c_1 @ wfT).reshape(1, FEATURE_DIM)
    w_fbs = jnp.pad(wf[:WE + 2],
                    ((0, K_eb - (WE + 2)), (0, 0))).astype(bf16)  # bssid+site
    w_fr = wf[WE + 2:].astype(bf16)                               # rssi columns

    # --- BN2 is a scalar affine after the relu: fold into lstm1 W_ih / bias ---
    a_2 = params["bn2_gamma"][0] * jax.lax.rsqrt(params["bn2_var"][0] + BN_EPS)
    c_2 = params["bn2_beta"][0] - params["bn2_mean"][0] * a_2

    def fuse_gates(w_ih, b_ih, b_hh, hidden, scale=None, shift=None):
        # PyTorch gate order: i, f, g, o.  Forget gate + W_hh dropped: exact
        # for seq_len == 1 with zero initial state (c0 == 0, h0 == 0).
        w = w_ih.reshape(4, hidden, -1)
        b = (b_ih + b_hh).reshape(4, hidden)
        wt = jnp.concatenate([w[0].T, w[2].T, w[3].T], axis=1)    # (in, 3H)
        bt = jnp.concatenate([b[0], b[2], b[3]], axis=0)          # (3H,)
        if scale is not None:
            bt = bt + shift * wt.sum(axis=0)
            wt = scale * wt                   # f32 fold, then bf16 cast below
        return wt.astype(bf16), bt.reshape(1, 3 * hidden)

    w_l1, b_l1 = fuse_gates(params["lstm1_w_ih"], params["lstm1_b_ih"],
                            params["lstm1_b_hh"], LSTM1_HIDDEN, a_2, c_2)
    w_l2, b_l2 = fuse_gates(params["lstm2_w_ih"], params["lstm2_b_ih"],
                            params["lstm2_b_hh"], LSTM2_HIDDEN)

    w_out = params["fc_out_w"].T                                  # (16, 3)
    b_out = params["fc_out_b"].reshape(1, 3)

    # --- Batch tiling: 1-D "parallel" grid over batch rows, weights
    #     VMEM-resident via constant index_maps. ---
    TB = _pick_tb(B)
    B_pad = _round_up(max(B, 8), TB)
    eb_es_p = _pad_rows(eb_es, B_pad)
    rs_p = _pad_rows(jnp.pad(rssi_feats.astype(bf16),
                             ((0, 0), (0, K_r - wifi_num))), B_pad)

    args = (eb_es_p, rs_p,
            w_rssi, b_rssi, w_fbs, w_fr, b_f,
            w_l1, b_l1, w_l2, b_l2, w_out, b_out)

    in_specs = [
        pl.BlockSpec((TB, K_eb), lambda i: (i, 0)),
        pl.BlockSpec((TB, K_r), lambda i: (i, 0)),
    ] + [pl.BlockSpec(a.shape, lambda i: (0, 0)) for a in args[2:]]

    out = pl.pallas_call(
        _og_lstm_kernel,
        out_shape=jax.ShapeDtypeStruct((B_pad, 3), jnp.float32),
        grid=(B_pad // TB,),
        in_specs=in_specs,
        out_specs=pl.BlockSpec((TB, 3), lambda i: (i, 0)),
        compiler_params=pltpu.CompilerParams(
            dimension_semantics=("parallel",)),
    )(*args)

    # torch .squeeze(): (B, 1, 3) -> (B, 3) for B > 1.
    # TODO(synk): for B == 1 torch would return shape (3,); we always return (B, 3).
    return out[:B]


# ----------------------------------------------------------------------------
# Pure-JAX f32 reference (mirrors the torch forward, eval mode) for validation
# ----------------------------------------------------------------------------
def reference_forward(params, bssid_feats, site_id, rssi_feats,
                      *, wifi_num, embedding_dim):
    B = rssi_feats.shape[0]
    WE = wifi_num * embedding_dim
    eb = jnp.take(params["embd_bssid"], bssid_feats, axis=0).reshape(B, WE)
    es = jnp.take(params["embd_site"], site_id, axis=0)

    def bn(x, g, b, m, v):
        return (x - m) / jnp.sqrt(v + BN_EPS) * g + b

    r = bn(rssi_feats, params["bn_rssi_gamma"], params["bn_rssi_beta"],
           params["bn_rssi_mean"], params["bn_rssi_var"])
    r = jax.nn.relu(r @ params["fc_rssi_w"].T + params["fc_rssi_b"])

    x = jnp.concatenate([eb, es, r], axis=-1)
    x = bn(x, params["bn1_gamma"], params["bn1_beta"],
           params["bn1_mean"], params["bn1_var"])
    # dropout: identity in eval mode
    x = jax.nn.relu(x @ params["fc_feat_w"].T + params["fc_feat_b"])
    x = bn(x, params["bn2_gamma"][0], params["bn2_beta"][0],
           params["bn2_mean"][0], params["bn2_var"][0])

    def lstm_cell(xin, w_ih, b_ih, b_hh):
        gates = xin @ w_ih.T + b_ih + b_hh      # h0 == 0, so no W_hh term
        i, f, g, o = jnp.split(gates, 4, axis=-1)
        c = jax.nn.sigmoid(i) * jnp.tanh(g)     # f * c0 == 0
        return jax.nn.sigmoid(o) * jnp.tanh(c)

    h1 = jax.nn.relu(lstm_cell(x, params["lstm1_w_ih"],
                               params["lstm1_b_ih"], params["lstm1_b_hh"]))
    h2 = jax.nn.relu(lstm_cell(h1, params["lstm2_w_ih"],
                               params["lstm2_b_ih"], params["lstm2_b_hh"]))
    return h2 @ params["fc_out_w"].T + params["fc_out_b"]


if __name__ == "__main__":
    # Small, module-consistent shapes (input_dim=wifi_num=20, embedding_dim=32).
    B = 8
    wifi_num = 20
    bssid_dim = 100
    site_id_dim = 10
    embedding_dim = 32

    key = jax.random.PRNGKey(0)
    k_param, k_bssid, k_site, k_rssi = jax.random.split(key, 4)

    params = init_params(k_param, wifi_num, bssid_dim, site_id_dim, embedding_dim)

    bssid_feats = jax.random.randint(k_bssid, (B, wifi_num), 0, bssid_dim, jnp.int32)
    site_id = jax.random.randint(k_site, (B,), 0, site_id_dim, jnp.int32)
    rssi_feats = jax.random.normal(k_rssi, (B, wifi_num), jnp.float32)

    out = og_lstm_forward(params, bssid_feats, site_id, rssi_feats,
                          wifi_num=wifi_num, embedding_dim=embedding_dim)
    out = jax.block_until_ready(out)
    assert out.shape == (B, 3), out.shape

    ref = reference_forward(params, bssid_feats, site_id, rssi_feats,
                            wifi_num=wifi_num, embedding_dim=embedding_dim)
    np.testing.assert_allclose(np.asarray(out), np.asarray(ref),
                               rtol=2e-2, atol=2e-2)

    print("KERNEL_OK")
</pallas_src>

<mosaic_0001>
module attributes {stable_mosaic.version = 11 : i64} {
  func.func @_og_lstm_kernel(%arg0: i32, %arg1: memref<8x656xbf16, #tpu.memory_space<vmem>>, %arg2: memref<8x32xbf16, #tpu.memory_space<vmem>>, %arg3: memref<32x640xbf16, #tpu.memory_space<vmem>>, %arg4: memref<1x640xf32, #tpu.memory_space<vmem>>, %arg5: memref<656x256xbf16, #tpu.memory_space<vmem>>, %arg6: memref<640x256xbf16, #tpu.memory_space<vmem>>, %arg7: memref<1x256xf32, #tpu.memory_space<vmem>>, %arg8: memref<256x384xbf16, #tpu.memory_space<vmem>>, %arg9: memref<1x384xf32, #tpu.memory_space<vmem>>, %arg10: memref<128x48xbf16, #tpu.memory_space<vmem>>, %arg11: memref<1x48xf32, #tpu.memory_space<vmem>>, %arg12: memref<16x3xf32, #tpu.memory_space<vmem>>, %arg13: memref<1x3xf32, #tpu.memory_space<vmem>>, %arg14: memref<8x3xf32, #tpu.memory_space<vmem>>) attributes {dimension_semantics = [#tpu.dimension_semantics<parallel>], iteration_bounds = array<i64: 1>, scalar_prefetch = 0 : i64, scratch_operands = 0 : i64, tpu.core_type = #tpu.core_type<tc>, window_params = [{transform_indices = @transform_0, window_bounds = array<i64: 8, 656>}, {transform_indices = @transform_1, window_bounds = array<i64: 8, 32>}, {pipeline_mode = #tpu.pipeline_mode<synchronous>, transform_indices = @transform_2, window_bounds = array<i64: 32, 640>}, {pipeline_mode = #tpu.pipeline_mode<synchronous>, transform_indices = @transform_3, window_bounds = array<i64: 1, 640>}, {pipeline_mode = #tpu.pipeline_mode<synchronous>, transform_indices = @transform_4, window_bounds = array<i64: 656, 256>}, {pipeline_mode = #tpu.pipeline_mode<synchronous>, transform_indices = @transform_5, window_bounds = array<i64: 640, 256>}, {pipeline_mode = #tpu.pipeline_mode<synchronous>, transform_indices = @transform_6, window_bounds = array<i64: 1, 256>}, {pipeline_mode = #tpu.pipeline_mode<synchronous>, transform_indices = @transform_7, window_bounds = array<i64: 256, 384>}, {pipeline_mode = #tpu.pipeline_mode<synchronous>, transform_indices = @transform_8, window_bounds = array<i64: 1, 384>}, {pipeline_mode = #tpu.pipeline_mode<synchronous>, transform_indices = @transform_9, window_bounds = array<i64: 128, 48>}, {pipeline_mode = #tpu.pipeline_mode<synchronous>, transform_indices = @transform_10, window_bounds = array<i64: 1, 48>}, {pipeline_mode = #tpu.pipeline_mode<synchronous>, transform_indices = @transform_11, window_bounds = array<i64: 16, 3>}, {pipeline_mode = #tpu.pipeline_mode<synchronous>, transform_indices = @transform_12, window_bounds = array<i64: 1, 3>}, {transform_indices = @transform_13, window_bounds = array<i64: 8, 3>}]} {
    %c0 = arith.constant 0 : index
    %c0_0 = arith.constant 0 : index
    %0 = vector.load %arg2[%c0, %c0_0] : memref<8x32xbf16, #tpu.memory_space<vmem>>, vector<8x32xbf16>
    %c0_1 = arith.constant 0 : index
    %c0_2 = arith.constant 0 : index
    %1 = vector.load %arg3[%c0_1, %c0_2] : memref<32x640xbf16, #tpu.memory_space<vmem>>, vector<32x640xbf16>
    %cst = arith.constant dense<0.000000e+00> : vector<8x640xf32>
    %2 = tpu.matmul %0, %1, %cst {dimension_numbers = #tpu.dot_dimension_numbers<[1], [0], [0], [1], [0, 0, 1, 1], [], []>} : vector<8x32xbf16>, vector<32x640xbf16>, vector<8x640xf32> -> vector<8x640xf32>
    %c0_3 = arith.constant 0 : index
    %c0_4 = arith.constant 0 : index
    %3 = vector.load %arg4[%c0_3, %c0_4] : memref<1x640xf32, #tpu.memory_space<vmem>>, vector<1x640xf32>
    %4 = vector.broadcast %3 : vector<1x640xf32> to vector<8x640xf32>
    %5 = arith.addf %2, %4 : vector<8x640xf32>
    %cst_5 = arith.constant 0.000000e+00 : f32
    %6 = vector.broadcast %cst_5 : f32 to vector<8x640xf32>
    %7 = arith.maximumf %5, %6 : vector<8x640xf32>
    %8 = arith.truncf %7 : vector<8x640xf32> to vector<8x640xbf16>
    %c0_6 = arith.constant 0 : index
    %c0_7 = arith.constant 0 : index
    %9 = vector.load %arg1[%c0_6, %c0_7] : memref<8x656xbf16, #tpu.memory_space<vmem>>, vector<8x656xbf16>
    %c0_8 = arith.constant 0 : index
    %c0_9 = arith.constant 0 : index
    %10 = vector.load %arg5[%c0_8, %c0_9] : memref<656x256xbf16, #tpu.memory_space<vmem>>, vector<656x256xbf16>
    %cst_10 = arith.constant dense<0.000000e+00> : vector<8x256xf32>
    %11 = tpu.matmul %9, %10, %cst_10 {dimension_numbers = #tpu.dot_dimension_numbers<[1], [0], [0], [1], [0, 0, 1, 1], [], []>} : vector<8x656xbf16>, vector<656x256xbf16>, vector<8x256xf32> -> vector<8x256xf32>
    %c0_11 = arith.constant 0 : index
    %c0_12 = arith.constant 0 : index
    %12 = vector.load %arg6[%c0_11, %c0_12] : memref<640x256xbf16, #tpu.memory_space<vmem>>, vector<640x256xbf16>
    %cst_13 = arith.constant dense<0.000000e+00> : vector<8x256xf32>
    %13 = tpu.matmul %8, %12, %cst_13 {dimension_numbers = #tpu.dot_dimension_numbers<[1], [0], [0], [1], [0, 0, 1, 1], [], []>} : vector<8x640xbf16>, vector<640x256xbf16>, vector<8x256xf32> -> vector<8x256xf32>
    %14 = arith.addf %11, %13 : vector<8x256xf32>
    %c0_14 = arith.constant 0 : index
    %c0_15 = arith.constant 0 : index
    %15 = vector.load %arg7[%c0_14, %c0_15] : memref<1x256xf32, #tpu.memory_space<vmem>>, vector<1x256xf32>
    %16 = vector.broadcast %15 : vector<1x256xf32> to vector<8x256xf32>
    %17 = arith.addf %14, %16 : vector<8x256xf32>
    %cst_16 = arith.constant 0.000000e+00 : f32
    %18 = vector.broadcast %cst_16 : f32 to vector<8x256xf32>
    %19 = arith.maximumf %17, %18 : vector<8x256xf32>
    %20 = arith.truncf %19 : vector<8x256xf32> to vector<8x256xbf16>
    %c0_17 = arith.constant 0 : index
    %c0_18 = arith.constant 0 : index
    %21 = vector.load %arg8[%c0_17, %c0_18] : memref<256x384xbf16, #tpu.memory_space<vmem>>, vector<256x384xbf16>
    %cst_19 = arith.constant dense<0.000000e+00> : vector<8x384xf32>
    %22 = tpu.matmul %20, %21, %cst_19 {dimension_numbers = #tpu.dot_dimension_numbers<[1], [0], [0], [1], [0, 0, 1, 1], [], []>} : vector<8x256xbf16>, vector<256x384xbf16>, vector<8x384xf32> -> vector<8x384xf32>
    %c0_20 = arith.constant 0 : index
    %c0_21 = arith.constant 0 : index
    %23 = vector.load %arg9[%c0_20, %c0_21] : memref<1x384xf32, #tpu.memory_space<vmem>>, vector<1x384xf32>
    %24 = vector.broadcast %23 : vector<1x384xf32> to vector<8x384xf32>
    %25 = arith.addf %22, %24 : vector<8x384xf32>
    %26 = vector.extract_strided_slice %25 {offsets = [0, 0], sizes = [8, 128], strides = [1, 1]} : vector<8x384xf32> to vector<8x128xf32>
    %27 = arith.negf %26 : vector<8x128xf32>
    %28 = math.exp %27 : vector<8x128xf32>
    %cst_22 = arith.constant 1.000000e+00 : f32
    %29 = vector.broadcast %cst_22 : f32 to vector<8x128xf32>
    %30 = arith.addf %29, %28 : vector<8x128xf32>
    %31 = arith.divf %29, %30 : vector<8x128xf32>
    %32 = vector.extract_strided_slice %25 {offsets = [0, 128], sizes = [8, 128], strides = [1, 1]} : vector<8x384xf32> to vector<8x128xf32>
    %33 = math.tanh %32 : vector<8x128xf32>
    %34 = vector.extract_strided_slice %25 {offsets = [0, 256], sizes = [8, 128], strides = [1, 1]} : vector<8x384xf32> to vector<8x128xf32>
    %35 = arith.negf %34 : vector<8x128xf32>
    %36 = math.exp %35 : vector<8x128xf32>
    %cst_23 = arith.constant 1.000000e+00 : f32
    %37 = vector.broadcast %cst_23 : f32 to vector<8x128xf32>
    %38 = arith.addf %37, %36 : vector<8x128xf32>
    %39 = arith.divf %37, %38 : vector<8x128xf32>
    %40 = arith.mulf %31, %33 : vector<8x128xf32>
    %41 = math.tanh %40 : vector<8x128xf32>
    %42 = arith.mulf %39, %41 : vector<8x128xf32>
    %cst_24 = arith.constant 0.000000e+00 : f32
    %43 = vector.broadcast %cst_24 : f32 to vector<8x128xf32>
    %44 = arith.maximumf %42, %43 : vector<8x128xf32>
    %45 = arith.truncf %44 : vector<8x128xf32> to vector<8x128xbf16>
    %c0_25 = arith.constant 0 : index
    %c0_26 = arith.constant 0 : index
    %46 = vector.load %arg10[%c0_25, %c0_26] : memref<128x48xbf16, #tpu.memory_space<vmem>>, vector<128x48xbf16>
    %cst_27 = arith.constant dense<0.000000e+00> : vector<8x48xf32>
    %47 = tpu.matmul %45, %46, %cst_27 {dimension_numbers = #tpu.dot_dimension_numbers<[1], [0], [0], [1], [0, 0, 1, 1], [], []>} : vector<8x128xbf16>, vector<128x48xbf16>, vector<8x48xf32> -> vector<8x48xf32>
    %c0_28 = arith.constant 0 : index
    %c0_29 = arith.constant 0 : index
    %48 = vector.load %arg11[%c0_28, %c0_29] : memref<1x48xf32, #tpu.memory_space<vmem>>, vector<1x48xf32>
    %49 = vector.broadcast %48 : vector<1x48xf32> to vector<8x48xf32>
    %50 = arith.addf %47, %49 : vector<8x48xf32>
    %51 = vector.extract_strided_slice %50 {offsets = [0, 0], sizes = [8, 16], strides = [1, 1]} : vector<8x48xf32> to vector<8x16xf32>
    %52 = arith.negf %51 : vector<8x16xf32>
    %53 = math.exp %52 : vector<8x16xf32>
    %cst_30 = arith.constant 1.000000e+00 : f32
    %54 = vector.broadcast %cst_30 : f32 to vector<8x16xf32>
    %55 = arith.addf %54, %53 : vector<8x16xf32>
    %56 = arith.divf %54, %55 : vector<8x16xf32>
    %57 = vector.extract_strided_slice %50 {offsets = [0, 16], sizes = [8, 16], strides = [1, 1]} : vector<8x48xf32> to vector<8x16xf32>
    %58 = math.tanh %57 : vector<8x16xf32>
    %59 = vector.extract_strided_slice %50 {offsets = [0, 32], sizes = [8, 16], strides = [1, 1]} : vector<8x48xf32> to vector<8x16xf32>
    %60 = arith.negf %59 : vector<8x16xf32>
    %61 = math.exp %60 : vector<8x16xf32>
    %cst_31 = arith.constant 1.000000e+00 : f32
    %62 = vector.broadcast %cst_31 : f32 to vector<8x16xf32>
    %63 = arith.addf %62, %61 : vector<8x16xf32>
    %64 = arith.divf %62, %63 : vector<8x16xf32>
    %65 = arith.mulf %56, %58 : vector<8x16xf32>
    %66 = math.tanh %65 : vector<8x16xf32>
    %67 = arith.mulf %64, %66 : vector<8x16xf32>
    %cst_32 = arith.constant 0.000000e+00 : f32
    %68 = vector.broadcast %cst_32 : f32 to vector<8x16xf32>
    %69 = arith.maximumf %67, %68 : vector<8x16xf32>
    %c0_33 = arith.constant 0 : index
    %c0_34 = arith.constant 0 : index
    %70 = vector.load %arg12[%c0_33, %c0_34] : memref<16x3xf32, #tpu.memory_space<vmem>>, vector<16x3xf32>
    %cst_35 = arith.constant dense<0.000000e+00> : vector<8x3xf32>
    %71 = tpu.matmul %69, %70, %cst_35 {dimension_numbers = #tpu.dot_dimension_numbers<[1], [0], [0], [1], [0, 0, 1, 1], [], []>} : vector<8x16xf32>, vector<16x3xf32>, vector<8x3xf32> -> vector<8x3xf32>
    %c0_36 = arith.constant 0 : index
    %c0_37 = arith.constant 0 : index
    %72 = vector.load %arg13[%c0_36, %c0_37] : memref<1x3xf32, #tpu.memory_space<vmem>>, vector<1x3xf32>
    %73 = vector.broadcast %72 : vector<1x3xf32> to vector<8x3xf32>
    %74 = arith.addf %71, %73 : vector<8x3xf32>
    %c0_38 = arith.constant 0 : index
    %c0_39 = arith.constant 0 : index
    %75 = vector.load %arg14[%c0_38, %c0_39] : memref<8x3xf32, #tpu.memory_space<vmem>>, vector<8x3xf32>
    tpu.vector_store %arg14[%c0_38, %c0_39], %74 {strides = array<i32>} : memref<8x3xf32, #tpu.memory_space<vmem>>, vector<8x3xf32>,
    return
  }
  func.func @transform_0(%arg0: i32) -> (i32, i32) {
    %c0_i32 = arith.constant 0 : i32
    %c0_i32_0 = arith.constant 0 : i32
    return %arg0, %c0_i32 : i32, i32
  }
  func.func @transform_1(%arg0: i32) -> (i32, i32) {
    %c0_i32 = arith.constant 0 : i32
    %c0_i32_0 = arith.constant 0 : i32
    return %arg0, %c0_i32 : i32, i32
  }
  func.func @transform_2(%arg0: i32) -> (i32, i32) {
    %c0_i32 = arith.constant 0 : i32
    %c0_i32_0 = arith.constant 0 : i32
    %c0_i32_1 = arith.constant 0 : i32
    return %c0_i32, %c0_i32_0 : i32, i32
  }
  func.func @transform_3(%arg0: i32) -> (i32, i32) {
    %c0_i32 = arith.constant 0 : i32
    %c0_i32_0 = arith.constant 0 : i32
    %c0_i32_1 = arith.constant 0 : i32
    return %c0_i32, %c0_i32_0 : i32, i32
  }
  func.func @transform_4(%arg0: i32) -> (i32, i32) {
    %c0_i32 = arith.constant 0 : i32
    %c0_i32_0 = arith.constant 0 : i32
    %c0_i32_1 = arith.constant 0 : i32
    return %c0_i32, %c0_i32_0 : i32, i32
  }
  func.func @transform_5(%arg0: i32) -> (i32, i32) {
    %c0_i32 = arith.constant 0 : i32
    %c0_i32_0 = arith.constant 0 : i32
    %c0_i32_1 = arith.constant 0 : i32
    return %c0_i32, %c0_i32_0 : i32, i32
  }
  func.func @transform_6(%arg0: i32) -> (i32, i32) {
    %c0_i32 = arith.constant 0 : i32
    %c0_i32_0 = arith.constant 0 : i32
    %c0_i32_1 = arith.constant 0 : i32
    return %c0_i32, %c0_i32_0 : i32, i32
  }
  func.func @transform_7(%arg0: i32) -> (i32, i32) {
    %c0_i32 = arith.constant 0 : i32
    %c0_i32_0 = arith.constant 0 : i32
    %c0_i32_1 = arith.constant 0 : i32
    return %c0_i32, %c0_i32_0 : i32, i32
  }
  func.func @transform_8(%arg0: i32) -> (i32, i32) {
    %c0_i32 = arith.constant 0 : i32
    %c0_i32_0 = arith.constant 0 : i32
    %c0_i32_1 = arith.constant 0 : i32
    return %c0_i32, %c0_i32_0 : i32, i32
  }
  func.func @transform_9(%arg0: i32) -> (i32, i32) {
    %c0_i32 = arith.constant 0 : i32
    %c0_i32_0 = arith.constant 0 : i32
    %c0_i32_1 = arith.constant 0 : i32
    return %c0_i32, %c0_i32_0 : i32, i32
  }
  func.func @transform_10(%arg0: i32) -> (i32, i32) {
    %c0_i32 = arith.constant 0 : i32
    %c0_i32_0 = arith.constant 0 : i32
    %c0_i32_1 = arith.constant 0 : i32
    return %c0_i32, %c0_i32_0 : i32, i32
  }
  func.func @transform_11(%arg0: i32) -> (i32, i32) {
    %c0_i32 = arith.constant 0 : i32
    %c0_i32_0 = arith.constant 0 : i32
    %c0_i32_1 = arith.constant 0 : i32
    return %c0_i32, %c0_i32_0 : i32, i32
  }
  func.func @transform_12(%arg0: i32) -> (i32, i32) {
    %c0_i32 = arith.constant 0 : i32
    %c0_i32_0 = arith.constant 0 : i32
    %c0_i32_1 = arith.constant 0 : i32
    return %c0_i32, %c0_i32_0 : i32, i32
  }
  func.func @transform_13(%arg0: i32) -> (i32, i32) {
    %c0_i32 = arith.constant 0 : i32
    %c0_i32_0 = arith.constant 0 : i32
    return %arg0, %c0_i32 : i32, i32
  }
}

</mosaic_0001>

<bundles_post_ra>
// kernel: og_lstm_forward.1
= control target key start
LH: loop header
LB: loop body
LE: loop exit
PB: predicated region body
PF: predicated region fallthrough
CT: control target
= control target key end

     0   :  { %vm122_vm0 = vcmask 261120   ;;  %vm1326_vm1 = vcmask 130048   ;;  %s3274_s24 = smov 112   ;;  %s3276_s27 = smov 96   ;;  %vm2092_vm14 = vcmask 23552   ;;  %s4834_s2 = inlined_call_operand.vmem [shape: bf16[32,640], index: 2, kind: input, shape index: {}]   ;;  %s4835_s1 = inlined_call_operand.vmem [shape: bf16[8,32], index: 1, kind: input, shape index: {}]   ;;  %s4836_s5 = inlined_call_operand.vmem [shape: bf16[640,256], index: 5, kind: input, shape index: {}]   ;;  %s4837_s3 = inlined_call_operand.vmem [shape: f32[1,640], index: 3, kind: input, shape index: {}]   ;;  %s4838_s4 = inlined_call_operand.vmem [shape: bf16[656,256], index: 4, kind: input, shape index: {}]   ;;  %s4839_s0 = inlined_call_operand.vmem [shape: bf16[8,656], index: 0, kind: input, shape index: {}]   ;;  %s4840_s7 = inlined_call_operand.vmem [shape: bf16[256,384], index: 7, kind: input, shape index: {}]   ;;  %s4841_s6 = inlined_call_operand.vmem [shape: f32[1,256], index: 6, kind: input, shape index: {}]   ;;  %s4842_s10 = inlined_call_operand.vmem [shape: f32[1,48], index: 10, kind: input, shape index: {}]   ;;  %s4843_s9 = inlined_call_operand.vmem [shape: bf16[128,48], index: 9, kind: input, shape index: {}]   ;;  %s4844_s8 = inlined_call_operand.vmem [shape: f32[1,384], index: 8, kind: input, shape index: {}]   ;;  %s4845_s11 = inlined_call_operand.vmem [shape: f32[16,3], index: 11, kind: input, shape index: {}]   ;;  %s4846_s12 = inlined_call_operand.vmem [shape: f32[1,3], index: 12, kind: input, shape index: {}]   ;;  %s4847_s13 = inlined_call_operand.vmem [shape: f32[8,3], index: 13, kind: output, shape index: {}]  }
   0x1   :  { %v2120_v0 = vld [vmem:[%s4834_s2 + $0x28] sm:$0xf]  ;;  %v3028_v1 = vld [vmem:[%s4834_s2 + $0x38] sm:$0xf0]  ;;  %v3026_v2 = vld [vmem:[%s4834_s2 + $0x2c] sm:$0xf] }
   0x2   :  { %v2121_v3 = vor.u32 %v3028_v1, %v2120_v0  ;;  %v2122_v4 = vld [vmem:[%s4834_s2 + $0x3c] sm:$0xf0]  ;;  %v2128_v5 = vld [vmem:[%s4834_s2 + $0x30] sm:$0xf]  ;;  %v3029_v6 = vld [vmem:[%s4834_s2 + $0x40] sm:$0xf0] }
   0x3   :  { %v2125_v7 = vor.u32 %v3026_v2, %v2122_v4  ;;  %v2129_v8 = vor.u32 %v3029_v6, %v2128_v5  ;;  %v3027_v9 = vld [vmem:[%s4834_s2 + $0x34] sm:$0xf]  ;;  %v2130_v10 = vld [vmem:[%s4834_s2 + $0x44] sm:$0xf0]  ;;  %v2100_v11 = vld [vmem:[%s4834_s2] sm:$0xf] }
   0x4   :  { %132 = vmatpush.bf16.msra.mxu0 %v2121_v3  ;;  %v2133_v12 = vor.u32 %v3027_v9, %v2130_v10  ;;  %v3023_v13 = vld [vmem:[%s4834_s2 + $0x10] sm:$0xf0]  ;;  %v3021_v14 = vld [vmem:[%s4834_s2 + $0x4] sm:$0xf]  ;;  %v2102_v15 = vld [vmem:[%s4834_s2 + $0x14] sm:$0xf0] }
   0x5   :  { %145 = vmatpush.bf16.msra.mxu1 %v2125_v7  ;;  %158 = vmatpush.bf16.msra.mxu2 %v2129_v8  ;;  %v2101_v16 = vor.u32 %v3023_v13, %v2100_v11  ;;  %v2105_v17 = vor.u32 %v3021_v14, %v2102_v15  ;;  %v2108_v18 = vld [vmem:[%s4834_s2 + $0x8] sm:$0xf]  ;;  %v3024_v19 = vld [vmem:[%s4834_s2 + $0x18] sm:$0xf0]  ;;  %v3022_v20 = vld [vmem:[%s4834_s2 + $0xc] sm:$0xf] }
   0x6   :  { %171 = vmatpush.bf16.msra.mxu3 %v2133_v12  ;;  %v2109_v21 = vor.u32 %v3024_v19, %v2108_v18  ;;  %v2110_v22 = vld [vmem:[%s4834_s2 + $0x1c] sm:$0xf0]  ;;  %v2136_v24 = vld [vmem:[%s4834_s2 + $0x38] sm:$0xf]  ;;  %v3030_v26 = vld [vmem:[%s4834_s2 + $0x48] sm:$0xf0] }
   0x7   :  { %v3398_v23 = vld [vmem:[%s4835_s1] sm:$0xf]  ;;  %v2113_v25 = vor.u32 %v3022_v20, %v2110_v22  ;;  %v2116_v27 = vld [vmem:[%s4834_s2 + $0x10] sm:$0xf]  ;;  %v3025_v28 = vld [vmem:[%s4834_s2 + $0x20] sm:$0xf0]  ;;  %v2137_v29 = vor.u32 %v3030_v26, %v2136_v24 }
   0x8   :  { %133 = vmatpush.bf16.msra.mxu0 %v2101_v16  ;;  %v2201_v30 = vld [vmem:[%s4836_s5 + $0x70] sm:$0xf]  ;;  %v3128_v31 = vld [vmem:[%s4836_s5 + $0x74] sm:$0xf0]  ;;  %v2193_v35 = vld [vmem:[%s4836_s5 + $0x60] sm:$0xf]  ;;  %v2117_v37 = vor.u32 %v3025_v28, %v2116_v27 }
   0x9   :  { %v2265_v32 = vld [vmem:[%s4836_s5 + $0xf0] sm:$0xf]  ;;  %146 = vmatpush.bf16.msra.mxu1 %v2105_v17  ;;  %159 = vmatpush.bf16.msra.mxu2 %v2109_v21  ;;  %v2202_v33 = vor.u32 %v3128_v31, %v2201_v30  ;;  %v3144_v34 = vld [vmem:[%s4836_s5 + $0xf4] sm:$0xf0]  ;;  %v3126_v36 = vld [vmem:[%s4836_s5 + $0x64] sm:$0xf0] }
   0xa   :  { %172 = vmatpush.bf16.msra.mxu3 %v2113_v25  ;;  %v2266_v38 = vor.u32 %v3144_v34, %v2265_v32  ;;  %v2257_v39 = vld [vmem:[%s4836_s5 + $0xe0] sm:$0xf]  ;;  %v3142_v40 = vld [vmem:[%s4836_s5 + $0xe4] sm:$0xf0]  ;;  %v2329_v41 = vld [vmem:[%s4836_s5 + $0x170] sm:$0xf]  ;;  %v2194_v42 = vor.u32 %v3126_v36, %v2193_v35 }
   0xb   :  { %2138 = vmatmul.msk.bf16.vlgmr.msra.gmra.mxu0 %vm122_vm0, %v3398_v23  ;;  %v3160_v43 = vld [vmem:[%s4836_s5 + $0x174] sm:$0xf0]  ;;  %v2393_v44 = vld [vmem:[%s4836_s5 + $0x1f0] sm:$0xf]  ;;  %v2258_v50 = vor.u32 %v3142_v40, %v2257_v39  ;;  %v2321_v52 = vld [vmem:[%s4836_s5 + $0x160] sm:$0xf] }
   0xc   :  { %184 = vmatpush.bf16.msrb.mxu0 %v2137_v29  ;;  %v3176_v45 = vld [vmem:[%s4836_s5 + $0x1f4] sm:$0xf0]  ;;  %2139 = vmatmul.msk.bf16.vlgmr.msra.gmra.mxu1 %vm122_vm0, %v3398_v23  ;;  %v2330_v46 = vor.u32 %v3160_v43, %v2329_v41  ;;  %v2185_v48 = vld [vmem:[%s4836_s5 + $0x50] sm:$0xf]  ;;  %v3158_v53 = vld [vmem:[%s4836_s5 + $0x164] sm:$0xf0] }
   0xd   :  { %766 = vmatpush.bf16.msrb.mxu1 %v2202_v33  ;;  %2140 = vmatmul.msk.bf16.vlgmr.msra.gmra.mxu2 %vm122_vm0, %v3398_v23  ;;  %v2394_v47 = vor.u32 %v3176_v45, %v2393_v44  ;;  %v3124_v49 = vld [vmem:[%s4836_s5 + $0x54] sm:$0xf0]  ;;  %v2249_v51 = vld [vmem:[%s4836_s5 + $0xd0] sm:$0xf]  ;;  %v2322_v55 = vor.u32 %v3158_v53, %v2321_v52  ;;  %v2385_v56 = vld [vmem:[%s4836_s5 + $0x1e0] sm:$0xf] }
   0xe   :  { %2141 = vmatmul.msk.bf16.vlgmr.msra.gmra.mxu3 %vm122_vm0, %v3398_v23  ;;  %779 = vmatpush.bf16.msrb.mxu2 %v2266_v38  ;;  %v3140_v54 = vld [vmem:[%s4836_s5 + $0xd4] sm:$0xf0]  ;;  %v3174_v57 = vld [vmem:[%s4836_s5 + $0x1e4] sm:$0xf0]  ;;  %v2186_v58 = vor.u32 %v3124_v49, %v2185_v48  ;;  %v2177_v60 = vld [vmem:[%s4836_s5 + $0x40] sm:$0xf] }
   0xf   :  { %792 = vmatpush.bf16.msrb.mxu3 %v2330_v46  ;;  %v2386_v59 = vor.u32 %v3174_v57, %v2385_v56  ;;  %v3122_v61 = vld [vmem:[%s4836_s5 + $0x44] sm:$0xf0]  ;;  %v2313_v62 = vld [vmem:[%s4836_s5 + $0x150] sm:$0xf]  ;;  %v3156_v63 = vld [vmem:[%s4836_s5 + $0x154] sm:$0xf0]  ;;  %v2250_v1 = vor.u32 %v3140_v54, %v2249_v51 }
  0x10   :  { %185 = vmatpush.bf16.msrb.mxu0 %v2117_v37  ;;  %v2377_v0 = vld [vmem:[%s4836_s5 + $0x1d0] sm:$0xf]  ;;  %v3172_v2 = vld [vmem:[%s4836_s5 + $0x1d4] sm:$0xf0]  ;;  %v2241_v3 = vld [vmem:[%s4836_s5 + $0xc0] sm:$0xf]  ;;  %v2314_v5 = vor.u32 %v3156_v63, %v2313_v62  ;;  %v2178_v6 = vor.u32 %v3122_v61, %v2177_v60 }
  0x11   :  { %767 = vmatpush.bf16.msrb.mxu1 %v2194_v42  ;;  %v3138_v4 = vld [vmem:[%s4836_s5 + $0xc4] sm:$0xf0]  ;;  %v2378_v7 = vor.u32 %v3172_v2, %v2377_v0  ;;  %v2305_v8 = vld [vmem:[%s4836_s5 + $0x140] sm:$0xf]  ;;  %v2169_v10 = vld [vmem:[%s4836_s5 + $0x30] sm:$0xf] }
  0x12   :  { %780 = vmatpush.bf16.msrb.mxu2 %v2258_v50  ;;  %v3154_v9 = vld [vmem:[%s4836_s5 + $0x144] sm:$0xf0]  ;;  %v3120_v11 = vld [vmem:[%s4836_s5 + $0x34] sm:$0xf0]  ;;  %v2242_v12 = vor.u32 %v3138_v4, %v2241_v3  ;;  %v2369_v13 = vld [vmem:[%s4836_s5 + $0x1c0] sm:$0xf] }
  0x13   :  { %793 = vmatpush.bf16.msrb.mxu3 %v2322_v55  ;;  %v3170_v14 = vld [vmem:[%s4836_s5 + $0x1c4] sm:$0xf0]  ;;  %v2233_v15 = vld [vmem:[%s4836_s5 + $0xb0] sm:$0xf]  ;;  %v3136_v16 = vld [vmem:[%s4836_s5 + $0xb4] sm:$0xf0]  ;;  %v2306_v17 = vor.u32 %v3154_v9, %v2305_v8  ;;  %v2170_v18 = vor.u32 %v3120_v11, %v2169_v10 }
  0x14   :  { %805 = vmatpush.bf16.msra.mxu0 %v2394_v47  ;;  %v2297_v19 = vld [vmem:[%s4836_s5 + $0x130] sm:$0xf]  ;;  %v3152_v20 = vld [vmem:[%s4836_s5 + $0x134] sm:$0xf0]  ;;  %v2370_v21 = vor.u32 %v3170_v14, %v2369_v13  ;;  %v2161_v22 = vld [vmem:[%s4836_s5 + $0x20] sm:$0xf]  ;;  %v2234_v25 = vor.u32 %v3136_v16, %v2233_v15 }
  0x15   :  { %768 = vmatpush.bf16.msrb.mxu1 %v2186_v58  ;;  %v3118_v24 = vld [vmem:[%s4836_s5 + $0x24] sm:$0xf0]  ;;  %v2361_v26 = vld [vmem:[%s4836_s5 + $0x1b0] sm:$0xf]  ;;  %v3168_v27 = vld [vmem:[%s4836_s5 + $0x1b4] sm:$0xf0]  ;;  %v2298_v30 = vor.u32 %v3152_v20, %v2297_v19 }
  0x16   :  { %781 = vmatpush.bf16.msrb.mxu2 %v2250_v1  ;;  %v2225_v28 = vld [vmem:[%s4836_s5 + $0xa0] sm:$0xf]  ;;  %v3134_v29 = vld [vmem:[%s4836_s5 + $0xa4] sm:$0xf0]  ;;  %v2162_v31 = vor.u32 %v3118_v24, %v2161_v22  ;;  %v2362_v34 = vor.u32 %v3168_v27, %v2361_v26  ;;  %v2153_v35 = vld [vmem:[%s4836_s5 + $0x10] sm:$0xf] }
  0x17   :  { %794 = vmatpush.bf16.msrb.mxu3 %v2314_v5  ;;  %v2289_v32 = vld [vmem:[%s4836_s5 + $0x120] sm:$0xf]  ;;  %v3150_v33 = vld [vmem:[%s4836_s5 + $0x124] sm:$0xf0]  ;;  %v2226_v36 = vor.u32 %v3134_v29, %v2225_v28  ;;  %v2217_v39 = vld [vmem:[%s4836_s5 + $0x90] sm:$0xf] }
  0x18   :  { %806 = vmatpush.bf16.msra.mxu0 %v2386_v59  ;;  %v2353_v37 = vld [vmem:[%s4836_s5 + $0x1a0] sm:$0xf]  ;;  %v3166_v38 = vld [vmem:[%s4836_s5 + $0x1a4] sm:$0xf0]  ;;  %v3132_v40 = vld [vmem:[%s4836_s5 + $0x94] sm:$0xf0]  ;;  %v2290_v41 = vor.u32 %v3150_v33, %v2289_v32 }
  0x19   :  { %769 = vmatpush.bf16.msrb.mxu1 %v2178_v6  ;;  %v2281_v43 = vld [vmem:[%s4836_s5 + $0x110] sm:$0xf]  ;;  %v3148_v44 = vld [vmem:[%s4836_s5 + $0x114] sm:$0xf0]  ;;  %v2354_v45 = vor.u32 %v3166_v38, %v2353_v37  ;;  %v2145_v46 = vld [vmem:[%s4836_s5] sm:$0xf]  ;;  %v2218_v49 = vor.u32 %v3132_v40, %v2217_v39 }
  0x1a   :  { %782 = vmatpush.bf16.msrb.mxu2 %v2242_v12  ;;  %v3114_v47 = vld [vmem:[%s4836_s5 + $0x4] sm:$0xf0]  ;;  %v2457_v48 = vld [vmem:[%s4836_s5 + $0x270] sm:$0xf]  ;;  %v3192_v50 = vld [vmem:[%s4836_s5 + $0x274] sm:$0xf0]  ;;  %v2282_v56 = vor.u32 %v3148_v44, %v2281_v43 }
  0x1b   :  { %795 = vmatpush.bf16.msrb.mxu3 %v2306_v17  ;;  %2142 = vmatmul.msk.bf16.vlgmr.msrb.gmra.mxu0 %vm122_vm0, %v3398_v23  ;;  %v3116_v23 = vld [vmem:[%s4836_s5 + $0x14] sm:$0xf0]  ;;  %v2345_v51 = vld [vmem:[%s4836_s5 + $0x190] sm:$0xf]  ;;  %v2209_v53 = vld [vmem:[%s4836_s5 + $0x80] sm:$0xf]  ;;  %v2146_v57 = vor.u32 %v3114_v47, %v2145_v46  ;;  %v2458_v61 = vor.u32 %v3192_v50, %v2457_v48 }
  0x1c   :  { %807 = vmatpush.bf16.msra.mxu0 %v2378_v7  ;;  %v2154_v42 = vor.u32 %v3116_v23, %v2153_v35  ;;  %v3164_v52 = vld [vmem:[%s4836_s5 + $0x194] sm:$0xf0]  ;;  %v3130_v54 = vld [vmem:[%s4836_s5 + $0x84] sm:$0xf0]  ;;  %v3127_v55 = vld [vmem:[%s4836_s5 + $0x74] sm:$0xf] }
  0x1d   :  { %770 = vmatpush.bf16.msrb.mxu1 %v2170_v18  ;;  %v2203_v58 = vld [vmem:[%s4836_s5 + $0x78] sm:$0xf0]  ;;  %v2273_v59 = vld [vmem:[%s4836_s5 + $0x100] sm:$0xf]  ;;  %v3146_v60 = vld [vmem:[%s4836_s5 + $0x104] sm:$0xf0]  ;;  %v2346_v62 = vor.u32 %v3164_v52, %v2345_v51  ;;  %v2210_v2 = vor.u32 %v3130_v54, %v2209_v53 }
  0x1e   :  { %783 = vmatpush.bf16.msrb.mxu2 %v2234_v25  ;;  %v2449_v63 = vld [vmem:[%s4836_s5 + $0x260] sm:$0xf]  ;;  %v3143_v0 = vld [vmem:[%s4836_s5 + $0xf4] sm:$0xf]  ;;  %v2267_v1 = vld [vmem:[%s4836_s5 + $0xf8] sm:$0xf0]  ;;  %v2206_v6 = vor.u32 %v3127_v55, %v2203_v58  ;;  %v2274_v7 = vor.u32 %v3146_v60, %v2273_v59 }
  0x1f   :  { %796 = vmatpush.bf16.msrb.mxu3 %v2298_v30  ;;  %v3190_v3 = vld [vmem:[%s4836_s5 + $0x264] sm:$0xf0]  ;;  %v2337_v4 = vld [vmem:[%s4836_s5 + $0x180] sm:$0xf]  ;;  %v3159_v8 = vld [vmem:[%s4836_s5 + $0x174] sm:$0xf]  ;;  %v2270_v12 = vor.u32 %v3143_v0, %v2267_v1 }
  0x20   :  { %808 = vmatpush.bf16.msra.mxu0 %v2370_v21  ;;  %v3162_v5 = vld [vmem:[%s4836_s5 + $0x184] sm:$0xf0]  ;;  %v2331_v9 = vld [vmem:[%s4836_s5 + $0x178] sm:$0xf0]  ;;  %v3125_v10 = vld [vmem:[%s4836_s5 + $0x64] sm:$0xf]  ;;  %v2450_v13 = vor.u32 %v3190_v3, %v2449_v63 }
  0x21   :  { %771 = vmatpush.bf16.msrb.mxu1 %v2162_v31  ;;  %v2195_v11 = vld [vmem:[%s4836_s5 + $0x68] sm:$0xf0]  ;;  %v2338_v14 = vor.u32 %v3162_v5, %v2337_v4  ;;  %v3141_v15 = vld [vmem:[%s4836_s5 + $0xe4] sm:$0xf]  ;;  %v2334_v17 = vor.u32 %v3159_v8, %v2331_v9  ;;  %v2441_v18 = vld [vmem:[%s4836_s5 + $0x250] sm:$0xf] }
  0x22   :  { %784 = vmatpush.bf16.msrb.mxu2 %v2226_v36  ;;  %v2259_v16 = vld [vmem:[%s4836_s5 + $0xe8] sm:$0xf0]  ;;  %v3188_v19 = vld [vmem:[%s4836_s5 + $0x254] sm:$0xf0]  ;;  %v2198_v20 = vor.u32 %v3125_v10, %v2195_v11  ;;  %v3157_v21 = vld [vmem:[%s4836_s5 + $0x164] sm:$0xf] }
  0x23   :  { %797 = vmatpush.bf16.msrb.mxu3 %v2290_v41  ;;  %v2323_v22 = vld [vmem:[%s4836_s5 + $0x168] sm:$0xf0]  ;;  %v3123_v24 = vld [vmem:[%s4836_s5 + $0x54] sm:$0xf]  ;;  %v2187_v25 = vld [vmem:[%s4836_s5 + $0x58] sm:$0xf0]  ;;  %v2262_v26 = vor.u32 %v3141_v15, %v2259_v16  ;;  %v2442_v27 = vor.u32 %v3188_v19, %v2441_v18 }
  0x24   :  { %809 = vmatpush.bf16.msra.mxu0 %v2362_v34  ;;  %v3139_v28 = vld [vmem:[%s4836_s5 + $0xd4] sm:$0xf]  ;;  %v2251_v29 = vld [vmem:[%s4836_s5 + $0xd8] sm:$0xf0]  ;;  %v2326_v30 = vor.u32 %v3157_v21, %v2323_v22  ;;  %v2433_v31 = vld [vmem:[%s4836_s5 + $0x240] sm:$0xf]  ;;  %v2190_v33 = vor.u32 %v3123_v24, %v2187_v25 }
  0x25   :  { %772 = vmatpush.bf16.msrb.mxu1 %v2154_v42  ;;  %v3186_v32 = vld [vmem:[%s4836_s5 + $0x244] sm:$0xf0]  ;;  %v3155_v34 = vld [vmem:[%s4836_s5 + $0x154] sm:$0xf]  ;;  %v2315_v35 = vld [vmem:[%s4836_s5 + $0x158] sm:$0xf0]  ;;  %v2254_v37 = vor.u32 %v3139_v28, %v2251_v29 }
  0x26   :  { %785 = vmatpush.bf16.msrb.mxu2 %v2218_v49  ;;  %v3121_v23 = vld [vmem:[%s4836_s5 + $0x44] sm:$0xf]  ;;  %v2179_v36 = vld [vmem:[%s4836_s5 + $0x48] sm:$0xf0]  ;;  %v2434_v38 = vor.u32 %v3186_v32, %v2433_v31  ;;  %v2318_v41 = vor.u32 %v3155_v34, %v2315_v35  ;;  %v2425_v42 = vld [vmem:[%s4836_s5 + $0x230] sm:$0xf] }
  0x27   :  { %798 = vmatpush.bf16.msrb.mxu3 %v2282_v56  ;;  %v3137_v39 = vld [vmem:[%s4836_s5 + $0xc4] sm:$0xf]  ;;  %v2243_v40 = vld [vmem:[%s4836_s5 + $0xc8] sm:$0xf0]  ;;  %v3184_v43 = vld [vmem:[%s4836_s5 + $0x234] sm:$0xf0]  ;;  %v2182_v44 = vor.u32 %v3121_v23, %v2179_v36 }
  0x28   :  { %810 = vmatpush.bf16.msra.mxu0 %v2354_v45  ;;  %v3153_v45 = vld [vmem:[%s4836_s5 + $0x144] sm:$0xf]  ;;  %v2307_v46 = vld [vmem:[%s4836_s5 + $0x148] sm:$0xf0]  ;;  %v3119_v47 = vld [vmem:[%s4836_s5 + $0x34] sm:$0xf]  ;;  %v2246_v49 = vor.u32 %v3137_v39, %v2243_v40  ;;  %v2426_v50 = vor.u32 %v3184_v43, %v2425_v42 }
  0x29   :  { %773 = vmatpush.bf16.msrb.mxu1 %v2146_v57  ;;  %v2171_v48 = vld [vmem:[%s4836_s5 + $0x38] sm:$0xf0]  ;;  %v2310_v51 = vor.u32 %v3153_v45, %v2307_v46  ;;  %v2417_v52 = vld [vmem:[%s4836_s5 + $0x220] sm:$0xf]  ;;  %v3182_v53 = vld [vmem:[%s4836_s5 + $0x224] sm:$0xf0] }
  0x2a   :  { %786 = vmatpush.bf16.msrb.mxu2 %v2210_v2  ;;  %v2174_v54 = vor.u32 %v3119_v47, %v2171_v48  ;;  %v3117_v55 = vld [vmem:[%s4836_s5 + $0x24] sm:$0xf]  ;;  %v2163_v56 = vld [vmem:[%s4836_s5 + $0x28] sm:$0xf0]  ;;  %v2418_v57 = vor.u32 %v3182_v53, %v2417_v52  ;;  %v3135_v59 = vld [vmem:[%s4836_s5 + $0xb4] sm:$0xf] }
  0x2b   :  { %799 = vmatpush.bf16.msrb.mxu3 %v2274_v7  ;;  %v2166_v58 = vor.u32 %v3117_v55, %v2163_v56  ;;  %v2235_v60 = vld [vmem:[%s4836_s5 + $0xb8] sm:$0xf0]  ;;  %v2409_v1 = vld [vmem:[%s4836_s5 + $0x210] sm:$0xf]  ;;  %v3180_v2 = vld [vmem:[%s4836_s5 + $0x214] sm:$0xf0] }
  0x2c   :  { %811 = vmatpush.bf16.msra.mxu0 %v2346_v62  ;;  %v2238_v62 = vor.u32 %v3135_v59, %v2235_v60  ;;  %v2299_v63 = vld [vmem:[%s4836_s5 + $0x138] sm:$0xf0]  ;;  %v2410_v3 = vor.u32 %v3180_v2, %v2409_v1  ;;  %v3115_v4 = vld [vmem:[%s4836_s5 + $0x14] sm:$0xf]  ;;  %v3133_v7 = vld [vmem:[%s4836_s5 + $0xa4] sm:$0xf] }
  0x2d   :  { %818 = vmatpush.bf16.msra.mxu1 %v2458_v61  ;;  %v3151_v61 = vld [vmem:[%s4836_s5 + $0x134] sm:$0xf]  ;;  %v2155_v5 = vld [vmem:[%s4836_s5 + $0x18] sm:$0xf0]  ;;  %v2227_v8 = vld [vmem:[%s4836_s5 + $0xa8] sm:$0xf0] }
  0x2e   :  { %831 = vmatpush.bf16.msra.mxu2 %v2206_v6  ;;  %v2302_v0 = vor.u32 %v3151_v61, %v2299_v63  ;;  %v2158_v6 = vor.u32 %v3115_v4, %v2155_v5  ;;  %v3149_v9 = vld [vmem:[%s4836_s5 + $0x124] sm:$0xf]  ;;  %v2230_v10 = vor.u32 %v3133_v7, %v2227_v8  ;;  %v2291_v11 = vld [vmem:[%s4836_s5 + $0x128] sm:$0xf0]  ;;  %v3131_v19 = vld [vmem:[%s4836_s5 + $0x94] sm:$0xf] }
  0x2f   :  { %844 = vmatpush.bf16.msra.mxu3 %v2270_v12  ;;  %v2294_v12 = vor.u32 %v3149_v9, %v2291_v11  ;;  %v3113_v15 = vld [vmem:[%s4836_s5 + $0x4] sm:$0xf]  ;;  %v3147_v22 = vld [vmem:[%s4836_s5 + $0x114] sm:$0xf]  ;;  %v2283_v24 = vld [vmem:[%s4836_s5 + $0x118] sm:$0xf0] }
  0x30   :  { %812 = vmatpush.bf16.msra.mxu0 %v2338_v14  ;;  %v3178_v14 = vld [vmem:[%s4836_s5 + $0x204] sm:$0xf0]  ;;  %v2286_v25 = vor.u32 %v3147_v22, %v2283_v24  ;;  %v3145_v29 = vld [vmem:[%s4836_s5 + $0x104] sm:$0xf]  ;;  %v3191_v40 = vld [vmem:[%s4836_s5 + $0x274] sm:$0xf] }
  0x31   :  { %819 = vmatpush.bf16.msra.mxu1 %v2450_v13  ;;  %v2401_v13 = vld [vmem:[%s4836_s5 + $0x200] sm:$0xf]  ;;  %v3189_v52 = vld [vmem:[%s4836_s5 + $0x264] sm:$0xf]  ;;  %v2451_v53 = vld [vmem:[%s4836_s5 + $0x268] sm:$0xf0] }
  0x32   :  { %832 = vmatpush.bf16.msra.mxu2 %v2198_v20  ;;  %v2402_v16 = vor.u32 %v3178_v14, %v2401_v13  ;;  %v2219_v20 = vld [vmem:[%s4836_s5 + $0x98] sm:$0xf0]  ;;  %v3809_v32 = vld [vmem:[%s4837_s3] sm:$0x1f]  ;;  %v2521_v59 = vld [vmem:[%s4838_s4 + $0x70] sm:$0xf] }
  0x33   :  { %845 = vmatpush.bf16.msra.mxu3 %v2262_v26  ;;  %v2222_v21 = vor.u32 %v3131_v19, %v2219_v20  ;;  %v3129_v26 = vld [vmem:[%s4836_s5 + $0x84] sm:$0xf]  ;;  %v61_v34 = vperm.slane %v3809_v32, 1  ;;  %v63_v47 = vperm.slane %v3809_v32, 3  ;;  %v3046_v60 = vld [vmem:[%s4838_s4 + $0x74] sm:$0xf0] }
  0x34   :  { %857 = vmatpush.bf16.msrb.mxu0 %v2334_v17  ;;  %v2147_v17 = vld [vmem:[%s4836_s5 + $0x8] sm:$0xf0]  ;;  %v2585_v61 = vld [vmem:[%s4838_s4 + $0xf0] sm:$0xf]  ;;  %v3062_v1 = vld [vmem:[%s4838_s4 + $0xf4] sm:$0xf0]  ;;  %v2522_v8 = vor.u32 %v3046_v60, %v2521_v59 }
  0x35   :  { %820 = vmatpush.bf16.msra.mxu1 %v2442_v27  ;;  %v2150_v18 = vor.u32 %v3113_v15, %v2147_v17  ;;  %v2211_v27 = vld [vmem:[%s4836_s5 + $0x88] sm:$0xf0]  ;;  %v3171_v2 = vld [vmem:[%s4836_s5 + $0x1d4] sm:$0xf]  ;;  %v64_v9 = vperm.slane %v3809_v32, 4  ;;  %v2586_v11 = vor.u32 %v3062_v1, %v2585_v61 }
  0x36   :  { %833 = vmatpush.bf16.msra.mxu2 %v2190_v33  ;;  %v2214_v28 = vor.u32 %v3129_v26, %v2211_v27  ;;  %v60_v33 = vperm.slane %v3809_v32, 0  ;;  %v3187_v5 = vld [vmem:[%s4836_s5 + $0x254] sm:$0xf]  ;;  %v2513_v13 = vld [vmem:[%s4838_s4 + $0x60] sm:$0xf] }
  0x37   :  { %846 = vmatpush.bf16.msra.mxu3 %v2254_v37  ;;  %v3175_v37 = vld [vmem:[%s4836_s5 + $0x1f4] sm:$0xf]  ;;  %v3044_v14 = vld [vmem:[%s4838_s4 + $0x64] sm:$0xf0]  ;;  %v2577_v15 = vld [vmem:[%s4838_s4 + $0xe0] sm:$0xf] }
  0x38   :  { %858 = vmatpush.bf16.msrb.mxu0 %v2326_v30  ;;  %v2275_v30 = vld [vmem:[%s4836_s5 + $0x108] sm:$0xf0]  ;;  %v3169_v19 = vld [vmem:[%s4836_s5 + $0x1c4] sm:$0xf]  ;;  %v3038_v59 = vld [vmem:[%s4838_s4 + $0x34] sm:$0xf0] }
  0x39   :  { %821 = vmatpush.bf16.msra.mxu1 %v2434_v38  ;;  %v2278_v31 = vor.u32 %v3145_v29, %v2275_v30  ;;  %v2395_v38 = vld [vmem:[%s4836_s5 + $0x1f8] sm:$0xf0]  ;;  %v2371_v20 = vld [vmem:[%s4836_s5 + $0x1c8] sm:$0xf0]  ;;  %v2505_v30 = vld [vmem:[%s4838_s4 + $0x50] sm:$0xf] }
  0x3a   :  { %834 = vmatpush.bf16.msra.mxu2 %v2182_v44  ;;  %v62_v44 = vperm.slane %v3809_v32, 2  ;;  %v2398_v45 = vor.u32 %v3175_v37, %v2395_v38  ;;  %v2435_v22 = vld [vmem:[%s4836_s5 + $0x248] sm:$0xf0]  ;;  %v2374_v29 = vor.u32 %v3169_v19, %v2371_v20  ;;  %v3183_v37 = vld [vmem:[%s4836_s5 + $0x234] sm:$0xf] }
  0x3b   :  { %847 = vmatpush.bf16.msra.mxu3 %v2246_v49  ;;  %v3173_v49 = vld [vmem:[%s4836_s5 + $0x1e4] sm:$0xf]  ;;  %v2427_v38 = vld [vmem:[%s4836_s5 + $0x238] sm:$0xf0]  ;;  %v3179_v1 = vld [vmem:[%s4836_s5 + $0x214] sm:$0xf] }
  0x3c   :  { %859 = vmatpush.bf16.msrb.mxu0 %v2318_v41  ;;  %v2459_v41 = vld [vmem:[%s4836_s5 + $0x278] sm:$0xf0]  ;;  %v2713_v19 = vld [vmem:[%s4838_s4 + $0x1f0] sm:$0xf]  ;;  %v3094_v20 = vld [vmem:[%s4838_s4 + $0x1f4] sm:$0xf0] }
  0x3d   :  { %822 = vmatpush.bf16.msra.mxu1 %v2426_v50  ;;  %v2462_v48 = vor.u32 %v3191_v40, %v2459_v41  ;;  %v2387_v50 = vld [vmem:[%s4836_s5 + $0x1e8] sm:$0xf0] }
  0x3e   :  { %835 = vmatpush.bf16.msra.mxu2 %v2174_v54 }
  0x3f   :  { %848 = vmatpush.bf16.msra.mxu3 %v2238_v62 }
  0x40   :  { %860 = vmatpush.bf16.msrb.mxu0 %v2310_v51 }
  0x41   :  { %823 = vmatpush.bf16.msra.mxu1 %v2418_v57 }
  0x42   :  { %836 = vmatpush.bf16.msra.mxu2 %v2166_v58  ;;  %v2390_v58 = vor.u32 %v3173_v49, %v2387_v50  ;;  %v3056_v49 = vld [vmem:[%s4838_s4 + $0xc4] sm:$0xf0]  ;;  %v3165_v50 = vld [vmem:[%s4836_s5 + $0x1a4] sm:$0xf] }
  0x43   :  { %849 = vmatpush.bf16.msra.mxu3 %v2230_v10 }
  0x44   :  { %861 = vmatpush.bf16.msrb.mxu0 %v2302_v0  ;;  %v2454_v0 = vor.u32 %v3189_v52, %v2451_v53  ;;  %v2355_v52 = vld [vmem:[%s4836_s5 + $0x1a8] sm:$0xf0]  ;;  %v3181_v53 = vld [vmem:[%s4836_s5 + $0x224] sm:$0xf] }
  0x45   :  { %824 = vmatpush.bf16.msra.mxu1 %v2410_v3  ;;  %v2379_v3 = vld [vmem:[%s4836_s5 + $0x1d8] sm:$0xf0]  ;;  %v2358_v60 = vor.u32 %v3165_v50, %v2355_v52  ;;  %v3074_v50 = vld [vmem:[%s4838_s4 + $0x154] sm:$0xf0]  ;;  %v2697_v52 = vld [vmem:[%s4838_s4 + $0x1d0] sm:$0xf] }
  0x46   :  { %837 = vmatpush.bf16.msra.mxu2 %v2158_v6  ;;  %v2443_v6 = vld [vmem:[%s4836_s5 + $0x258] sm:$0xf0] }
  0x47   :  { %850 = vmatpush.bf16.msra.mxu3 %v2222_v21  ;;  %v2446_v17 = vor.u32 %v3187_v5, %v2443_v6  ;;  %v3185_v21 = vld [vmem:[%s4836_s5 + $0x244] sm:$0xf]  ;;  %v2481_v5 = vld [vmem:[%s4838_s4 + $0x20] sm:$0xf]  ;;  %v3036_v6 = vld [vmem:[%s4838_s4 + $0x24] sm:$0xf0] }
  0x48   :  { %862 = vmatpush.bf16.msrb.mxu0 %v2294_v12  ;;  %v2382_v12 = vor.u32 %v3171_v2, %v2379_v3  ;;  %v2411_v2 = vld [vmem:[%s4836_s5 + $0x218] sm:$0xf0] }
  0x49   :  { %825 = vmatpush.bf16.msra.mxu1 %v2402_v16 }
  0x4a   :  { %838 = vmatpush.bf16.msra.mxu2 %v2150_v18  ;;  %v3060_v18 = vld [vmem:[%s4838_s4 + $0xe4] sm:$0xf0] }
  0x4b   :  { %851 = vmatpush.bf16.msra.mxu3 %v2214_v28  ;;  %v2578_v28 = vor.u32 %v3060_v18, %v2577_v15  ;;  %v2403_v15 = vld [vmem:[%s4836_s5 + $0x208] sm:$0xf0]  ;;  %v2482_v18 = vor.u32 %v3036_v6, %v2481_v5  ;;  %v3043_v6 = vld [vmem:[%s4838_s4 + $0x64] sm:$0xf] }
  0x4c   :  { %863 = vmatpush.bf16.msrb.mxu0 %v2286_v25  ;;  %v2514_v25 = vor.u32 %v3044_v14, %v2513_v13  ;;  %v2339_v13 = vld [vmem:[%s4836_s5 + $0x188] sm:$0xf0]  ;;  %v3177_v14 = vld [vmem:[%s4836_s5 + $0x204] sm:$0xf] }
  0x50   :  { %864 = vmatpush.bf16.msrb.mxu0 %v2278_v31  ;;  %v3042_v31 = vld [vmem:[%s4838_s4 + $0x54] sm:$0xf0] }
  0x51   :  { %v2506_v40 = vor.u32 %v3042_v31, %v2505_v30  ;;  %v2641_v30 = vld [vmem:[%s4838_s4 + $0x160] sm:$0xf]  ;;  %v3076_v31 = vld [vmem:[%s4838_s4 + $0x164] sm:$0xf0] }
  0x88   :  { %v135_v35 = vpop.f32.mrf.mxu0 }
  0x89   :  { %v136_v23 = vadd.f32 %v135_v35, %v60_v33  ;;  %v148_v36 = vpop.f32.mrf.mxu1  ;;  %v2438_v33 = vor.u32 %v3185_v21, %v2435_v22  ;;  %v3058_v35 = vld [vmem:[%s4838_s4 + $0xd4] sm:$0xf0] }
  0x8a   :  { %v149_v39 = vadd.f32 %v148_v36, %v61_v34  ;;  %v2569_v34 = vld [vmem:[%s4838_s4 + $0xd0] sm:$0xf]  ;;  %v2363_v36 = vld [vmem:[%s4836_s5 + $0x1b8] sm:$0xf0]  ;;  %v3034_v22 = vld [vmem:[%s4838_s4 + $0x14] sm:$0xf0] }
  0x8b   :  { %v191_v42 = vmax.f32 %v136_v23, 0.0  ;;  %v3167_v23 = vld [vmem:[%s4836_s5 + $0x1b4] sm:$0xf]  ;;  %v2570_v41 = vor.u32 %v3058_v35, %v2569_v34  ;;  %v3092_v34 = vld [vmem:[%s4838_s4 + $0x1e4] sm:$0xf0] }
  0x8c   :  { %v192_v43 = vmax.f32 %v149_v39, 0.0  ;;  %v2465_v35 = vld [vmem:[%s4838_s4] sm:$0xf] }
  0x8d   :  { %v3826_v46 = vpack.c.bf16 %v191_v42, %v191_v42  ;;  %v2497_v42 = vld [vmem:[%s4838_s4 + $0x40] sm:$0xf] }
  0x8e   :  { %v3835_v51 = vpack.c.bf16 %v192_v43, %v192_v43  ;;  %v3040_v43 = vld [vmem:[%s4838_s4 + $0x44] sm:$0xf0] }
  0x8f   :  { %774 = vmatmul.bf16.vlgmr.msrb.gmra.mxu1 %v3826_v46 }
  0x90   :  { %v161_v54 = vpop.f32.mrf.mxu2  ;;  %787 = vmatmul.bf16.vlgmr.msrb.gmra.mxu2 %v3835_v51  ;;  %870 = vmatpush.bf16.msrb.mxu1 %v2398_v45  ;;  %v137_v57 = vpop.f32.mrf.mxu0  ;;  %v2366_v45 = vor.u32 %v3167_v23, %v2363_v36  ;;  %v3032_v36 = vld [vmem:[%s4838_s4 + $0x4] sm:$0xf0] }
  0x91   :  { %v162_v55 = vadd.f32 %v161_v54, %v62_v44  ;;  %v174_v56 = vpop.f32.mrf.mxu3  ;;  %883 = vmatpush.bf16.msrb.mxu2 %v2462_v48  ;;  %v150_v63 = vpop.f32.mrf.mxu1  ;;  %v2561_v48 = vld [vmem:[%s4838_s4 + $0xc0] sm:$0xf]  ;;  %v2419_v54 = vld [vmem:[%s4836_s5 + $0x228] sm:$0xf0] }
  0x92   :  { %v175_v62 = vadd.f32 %v174_v56, %v63_v47  ;;  %v2430_v47 = vor.u32 %v3183_v37, %v2427_v38  ;;  %v2562_v56 = vor.u32 %v3056_v49, %v2561_v48  ;;  %v2422_v61 = vor.u32 %v3181_v53, %v2419_v54  ;;  %v3163_v63 = vld [vmem:[%s4836_s5 + $0x194] sm:$0xf]  ;;  %v2529_v37 = vld [vmem:[%s4838_s4 + $0x80] sm:$0xf]  ;;  %v3112_v48 = vld [vmem:[%s4838_s4 + $0x284] sm:$0xf0] }
  0x93   :  { %v193_v4 = vmax.f32 %v162_v55, 0.0  ;;  %v2498_v55 = vor.u32 %v3040_v43, %v2497_v42  ;;  %v201_v38 = vld [vmem:[%s4839_s0] sm:$0xff]  ;;  %v2642_v42 = vor.u32 %v3076_v31, %v2641_v30  ;;  %v2466_v49 = vor.u32 %v3032_v36, %v2465_v35  ;;  %v3090_v53 = vld [vmem:[%s4838_s4 + $0x1d4] sm:$0xf0] }
  0x94   :  { %v194_v7 = vmax.f32 %v175_v62, 0.0  ;;  %871 = vmatpush.bf16.msrb.mxu1 %v2390_v58  ;;  %v2489_v58 = vld [vmem:[%s4838_s4 + $0x30] sm:$0xf]  ;;  %v899_v54 = vunpack.c.l.b16 %v201_v38  ;;  %v3039_v31 = vld [vmem:[%s4838_s4 + $0x44] sm:$0xf] }
  0x95   :  { %v3870_v10 = vpack.c.bf16 %v193_v4, %v193_v4  ;;  %884 = vmatpush.bf16.msrb.mxu2 %v2454_v0  ;;  %v2553_v62 = vld [vmem:[%s4838_s4 + $0xb0] sm:$0xf]  ;;  %v2347_v0 = vld [vmem:[%s4836_s5 + $0x198] sm:$0xf0]  ;;  %v2490_v3 = vor.u32 %v3038_v59, %v2489_v58  ;;  %v3045_v58 = vld [vmem:[%s4838_s4 + $0x74] sm:$0xf] }
  0x96   :  { %v3881_v16 = vpack.c.bf16 %v194_v7, %v194_v7  ;;  %v2545_v7 = vld [vmem:[%s4838_s4 + $0xa0] sm:$0xf]  ;;  %v3102_v35 = vld [vmem:[%s4838_s4 + $0x234] sm:$0xf0] }
  0x97   :  { %800 = vmatmul.bf16.vlgmr.msrb.gmra.mxu3 %v3870_v10 }
  0x98   :  { %813 = vmatmul.bf16.vlgmr.msra.gmra.mxu0 %v3881_v16  ;;  %1330 = vmatpush.bf16.msrb.mxu3 %v2522_v8  ;;  %v163_v24 = vpop.f32.mrf.mxu2  ;;  %v187_v27 = vpop.f32.mrf.mxu0  ;;  %v2350_v8 = vor.u32 %v3163_v63, %v2347_v0  ;;  %v4094_v63 = vpack.c.b16 %v899_v54, %v899_v54  ;;  %v3064_v54 = vld [vmem:[%s4838_s4 + $0x104] sm:$0xf0] }
  0x99   :  { %1343 = vmatpush.bf16.msra.mxu0 %v2586_v11  ;;  %v176_v26 = vpop.f32.mrf.mxu3  ;;  %872 = vmatpush.bf16.msrb.mxu1 %v2382_v12  ;;  %v188_v32 = vadd.f32 %v187_v27, %v64_v9  ;;  %v2414_v9 = vor.u32 %v3179_v1, %v2411_v2  ;;  %v3052_v11 = vld [vmem:[%s4838_s4 + $0xa4] sm:$0xf0]  ;;  %v3161_v12 = vld [vmem:[%s4836_s5 + $0x184] sm:$0xf]  ;;  %v3050_v27 = vld [vmem:[%s4838_s4 + $0x94] sm:$0xf0] }
  0x9a   :  { %885 = vmatpush.bf16.msrb.mxu2 %v2446_v17  ;;  %v2649_v17 = vld [vmem:[%s4838_s4 + $0x170] sm:$0xf]  ;;  %v2546_v21 = vor.u32 %v3052_v11, %v2545_v7  ;;  %v2342_v24 = vor.u32 %v3161_v12, %v2339_v13  ;;  %v3072_v1 = vld [vmem:[%s4838_s4 + $0x144] sm:$0xf0]  ;;  %v2689_v2 = vld [vmem:[%s4838_s4 + $0x1c0] sm:$0xf] }
  0x9b   :  { %v195_v39 = vmax.f32 %v188_v32, 0.0  ;;  %v2537_v26 = vld [vmem:[%s4838_s4 + $0x90] sm:$0xf]  ;;  %v2515_v7 = vld [vmem:[%s4838_s4 + $0x68] sm:$0xf0] }
  0x9c   :  { %1331 = vmatpush.bf16.msrb.mxu3 %v2514_v25  ;;  %v2406_v25 = vor.u32 %v3177_v14, %v2403_v15  ;;  %v2538_v23 = vor.u32 %v3050_v27, %v2537_v26  ;;  %v2617_v13 = vld [vmem:[%s4838_s4 + $0x130] sm:$0xf]  ;;  %v3070_v14 = vld [vmem:[%s4838_s4 + $0x134] sm:$0xf0]  ;;  %v3068_v26 = vld [vmem:[%s4838_s4 + $0x124] sm:$0xf0] }
  0x9d   :  { %1344 = vmatpush.bf16.msra.mxu0 %v2578_v28  ;;  %873 = vmatpush.bf16.msrb.mxu1 %v2374_v29  ;;  %v3930_v44 = vpack.c.bf16 %v195_v39, %v195_v39  ;;  %v2714_v29 = vor.u32 %v3094_v20, %v2713_v19  ;;  %v3048_v39 = vld [vmem:[%s4838_s4 + $0x84] sm:$0xf0]  ;;  %v2681_v15 = vld [vmem:[%s4838_s4 + $0x1b0] sm:$0xf]  ;;  %v3041_v19 = vld [vmem:[%s4838_s4 + $0x54] sm:$0xf] }
  0x9e   :  { %886 = vmatpush.bf16.msrb.mxu2 %v2438_v33  ;;  %v2705_v33 = vld [vmem:[%s4838_s4 + $0x1e0] sm:$0xf]  ;;  %v2507_v20 = vld [vmem:[%s4838_s4 + $0x58] sm:$0xf0] }
  0x9f   :  { %826 = vmatmul.bf16.vlgmr.msra.gmra.mxu1 %v3930_v44  ;;  %v2706_v43 = vor.u32 %v3092_v34, %v2705_v33  ;;  %v2673_v27 = vld [vmem:[%s4838_s4 + $0x1a0] sm:$0xf]  ;;  %v2499_v33 = vld [vmem:[%s4838_s4 + $0x48] sm:$0xf0]  ;;  %v2745_v34 = vld [vmem:[%s4838_s4 + $0x230] sm:$0xf] }
  0xa0   :  { %1332 = vmatpush.bf16.msrb.mxu3 %v2506_v40  ;;  %839 = vmatmul.bf16.vlgmr.msra.gmra.mxu2 %v3826_v46  ;;  %v189_v57 = vpop.f32.mrf.mxu0  ;;  %v3054_v46 = vld [vmem:[%s4838_s4 + $0xb4] sm:$0xf0]  ;;  %v2777_v40 = vld [vmem:[%s4838_s4 + $0x270] sm:$0xf] }
  0xa1   :  { %1345 = vmatpush.bf16.msra.mxu0 %v2570_v41  ;;  %874 = vmatpush.bf16.msrb.mxu1 %v2366_v45  ;;  %v2554_v4 = vor.u32 %v3054_v46, %v2553_v62  ;;  %v3110_v41 = vld [vmem:[%s4838_s4 + $0x274] sm:$0xf0]  ;;  %v2633_v45 = vld [vmem:[%s4838_s4 + $0x150] sm:$0xf]  ;;  %v2698_v46 = vor.u32 %v3090_v53, %v2697_v52 }
  0xa2   :  { %887 = vmatpush.bf16.msrb.mxu2 %v2430_v47  ;;  %v2785_v47 = vld [vmem:[%s4838_s4 + $0x280] sm:$0xf]  ;;  %v2778_v57 = vor.u32 %v3110_v41, %v2777_v40  ;;  %v2634_v62 = vor.u32 %v3074_v50, %v2633_v45  ;;  %v3082_v40 = vld [vmem:[%s4838_s4 + $0x194] sm:$0xf0]  ;;  %v3037_v45 = vld [vmem:[%s4838_s4 + $0x34] sm:$0xf] }
  0xa3   :  { %v2786_v59 = vor.u32 %v3112_v48, %v2785_v47  ;;  %v2491_v47 = vld [vmem:[%s4838_s4 + $0x38] sm:$0xf0]  ;;  %v2737_v48 = vld [vmem:[%s4838_s4 + $0x220] sm:$0xf] }
  0xa4   :  { %1333 = vmatpush.bf16.msrb.mxu3 %v2498_v55  ;;  %v900_v55 = vunpack.c.h.b16 %v201_v38  ;;  %v3066_v38 = vld [vmem:[%s4838_s4 + $0x114] sm:$0xf0]  ;;  %v2593_v50 = vld [vmem:[%s4838_s4 + $0x100] sm:$0xf] }
  0xa5   :  { %1346 = vmatpush.bf16.msra.mxu0 %v2562_v56  ;;  %875 = vmatpush.bf16.msrb.mxu1 %v2358_v60  ;;  %v2530_v56 = vor.u32 %v3048_v39, %v2529_v37  ;;  %v2523_v60 = vld [vmem:[%s4838_s4 + $0x78] sm:$0xf0]  ;;  %v2601_v37 = vld [vmem:[%s4838_s4 + $0x110] sm:$0xf] }
  0xa6   :  { %888 = vmatpush.bf16.msrb.mxu2 %v2422_v61  ;;  %v2769_v61 = vld [vmem:[%s4838_s4 + $0x260] sm:$0xf]  ;;  %v4096_v0 = vpack.c.b16 %v900_v55, %v900_v55  ;;  %v2665_v39 = vld [vmem:[%s4838_s4 + $0x190] sm:$0xf]  ;;  %v2602_v52 = vor.u32 %v3066_v38, %v2601_v37  ;;  %v2779_v37 = vld [vmem:[%s4838_s4 + $0x278] sm:$0xf0] }
  0xa7   :  { %852 = vmatmul.bf16.vlgmr.msra.gmra.mxu3 %v3835_v51  ;;  %v3078_v51 = vld [vmem:[%s4838_s4 + $0x174] sm:$0xf0]  ;;  %v2666_v53 = vor.u32 %v3082_v40, %v2665_v39  ;;  %v2657_v55 = vld [vmem:[%s4838_s4 + $0x180] sm:$0xf]  ;;  %v3091_v38 = vld [vmem:[%s4838_s4 + $0x1e4] sm:$0xf] }
  0xa8   :  { %865 = vmatmul.bf16.vlgmr.msrb.gmra.mxu0 %v3870_v10  ;;  %1334 = vmatpush.bf16.msrb.mxu3 %v2490_v3  ;;  %v2473_v10 = vld [vmem:[%s4838_s4 + $0x10] sm:$0xf]  ;;  %v2650_v28 = vor.u32 %v3078_v51, %v2649_v17  ;;  %v3088_v3 = vld [vmem:[%s4838_s4 + $0x1c4] sm:$0xf0]  ;;  %v3086_v17 = vld [vmem:[%s4838_s4 + $0x1b4] sm:$0xf0] }
  0xa9   :  { %1347 = vmatpush.bf16.msra.mxu0 %v2554_v4  ;;  %876 = vmatpush.bf16.msrb.mxu1 %v2350_v8  ;;  %v2474_v32 = vor.u32 %v3034_v22, %v2473_v10  ;;  %v2526_v4 = vor.u32 %v3045_v58, %v2523_v60  ;;  %v2761_v8 = vld [vmem:[%s4838_s4 + $0x250] sm:$0xf]  ;;  %v2690_v12 = vor.u32 %v3088_v3, %v2689_v2  ;;  %v3104_v10 = vld [vmem:[%s4838_s4 + $0x244] sm:$0xf0]  ;;  %v3061_v60 = vld [vmem:[%s4838_s4 + $0xf4] sm:$0xf] }
  0xaa   :  { %889 = vmatpush.bf16.msrb.mxu2 %v2414_v9  ;;  %v3106_v9 = vld [vmem:[%s4838_s4 + $0x254] sm:$0xf0]  ;;  %v2618_v22 = vor.u32 %v3070_v14, %v2617_v13  ;;  %v3080_v58 = vld [vmem:[%s4838_s4 + $0x184] sm:$0xf0]  ;;  %v2729_v2 = vld [vmem:[%s4838_s4 + $0x210] sm:$0xf] }
  0xab   :  { %v2762_v51 = vor.u32 %v3106_v9, %v2761_v8  ;;  %v3098_v3 = vld [vmem:[%s4838_s4 + $0x214] sm:$0xf0]  ;;  %v2707_v39 = vld [vmem:[%s4838_s4 + $0x1e8] sm:$0xf0] }
  0xac   :  { %1335 = vmatpush.bf16.msrb.mxu3 %v2482_v18  ;;  %v2518_v18 = vor.u32 %v3043_v6, %v2515_v7  ;;  %v2594_v6 = vor.u32 %v3064_v54, %v2593_v50  ;;  %v2658_v7 = vor.u32 %v3080_v58, %v2657_v55  ;;  %v2730_v14 = vor.u32 %v3098_v3, %v2729_v2  ;;  %v3071_v50 = vld [vmem:[%s4838_s4 + $0x144] sm:$0xf]  ;;  %v2771_v54 = vld [vmem:[%s4838_s4 + $0x268] sm:$0xf0]  ;;  %v3089_v55 = vld [vmem:[%s4838_s4 + $0x1d4] sm:$0xf] }
  0xad   :  { %1348 = vmatpush.bf16.msra.mxu0 %v2546_v21  ;;  %877 = vmatpush.bf16.msrb.mxu1 %v2342_v24  ;;  %v2753_v21 = vld [vmem:[%s4838_s4 + $0x240] sm:$0xf]  ;;  %v2682_v24 = vor.u32 %v3086_v17, %v2681_v15  ;;  %v2579_v15 = vld [vmem:[%s4838_s4 + $0xe8] sm:$0xf0]  ;;  %v3075_v17 = vld [vmem:[%s4838_s4 + $0x164] sm:$0xf] }
  0xae   :  { %890 = vmatpush.bf16.msrb.mxu2 %v2406_v25  ;;  %v2609_v25 = vld [vmem:[%s4838_s4 + $0x120] sm:$0xf]  ;;  %v2754_v30 = vor.u32 %v3104_v10, %v2753_v21  ;;  %v3096_v10 = vld [vmem:[%s4838_s4 + $0x204] sm:$0xf0]  ;;  %v2763_v2 = vld [vmem:[%s4838_s4 + $0x258] sm:$0xf0] }
  0xaf   :  { %v2721_v21 = vld [vmem:[%s4838_s4 + $0x200] sm:$0xf]  ;;  %v3087_v3 = vld [vmem:[%s4838_s4 + $0x1c4] sm:$0xf] }
  0xb0   :  { %1336 = vmatpush.bf16.msrb.mxu3 %v2474_v32  ;;  %878 = vmatmul.bf16.vlgmr.msrb.gmra.mxu1 %v3881_v16  ;;  %v3108_v16 = vld [vmem:[%s4838_s4 + $0x264] sm:$0xf0]  ;;  %v4163_v32 = vld [vmem:[%s4839_s0 + $0x10] sm:$0xff] }
  0xb1   :  { %1356 = vmatpush.bf16.msra.mxu1 %v2650_v28  ;;  %1349 = vmatpush.bf16.msra.mxu0 %v2538_v23  ;;  %v2770_v5 = vor.u32 %v3108_v16, %v2769_v61  ;;  %v3084_v28 = vld [vmem:[%s4838_s4 + $0x1a4] sm:$0xf0]  ;;  %v2610_v23 = vor.u32 %v3068_v26, %v2609_v25  ;;  %v904_v41 = vunpack.c.h.b16 %v4163_v32  ;;  %v2494_v61 = vor.u32 %v3037_v45, %v2491_v47  ;;  %v3055_v45 = vld [vmem:[%s4838_s4 + $0xc4] sm:$0xf]  ;;  %v2563_v47 = vld [vmem:[%s4838_s4 + $0xc8] sm:$0xf0] }
  0xb2   :  { %1369 = vmatpush.bf16.msra.mxu2 %v2714_v29  ;;  %v2510_v29 = vor.u32 %v3041_v19, %v2507_v20  ;;  %v2674_v36 = vor.u32 %v3084_v28, %v2673_v27  ;;  %v2475_v20 = vld [vmem:[%s4838_s4 + $0x18] sm:$0xf0]  ;;  %v903_v27 = vunpack.c.l.b16 %v4163_v32  ;;  %v3031_v28 = vld [vmem:[%s4838_s4 + $0x4] sm:$0xf]  ;;  %v2566_v58 = vor.u32 %v3055_v45, %v2563_v47 }
  0xb3   :  { %891 = vmatmul.bf16.vlgmr.msrb.gmra.mxu2 %v3930_v44  ;;  %v2625_v44 = vld [vmem:[%s4838_s4 + $0x140] sm:$0xf]  ;;  %v2571_v32 = vld [vmem:[%s4838_s4 + $0xd8] sm:$0xf0] }
  0xb4   :  { %1337 = vmatpush.bf16.msrb.mxu3 %v2466_v49  ;;  %v2626_v11 = vor.u32 %v3072_v1, %v2625_v44  ;;  %v3100_v49 = vld [vmem:[%s4838_s4 + $0x224] sm:$0xf0]  ;;  %v2651_v44 = vld [vmem:[%s4838_s4 + $0x178] sm:$0xf0]  ;;  %v2483_v1 = vld [vmem:[%s4838_s4 + $0x28] sm:$0xf0]  ;;  %v4309_v40 = vpack.c.b16 %v903_v27, %v903_v27 }
  0xb5   :  { %1357 = vmatpush.bf16.msra.mxu1 %v2642_v42  ;;  %1350 = vmatpush.bf16.msra.mxu0 %v2530_v56  ;;  %v2502_v42 = vor.u32 %v3039_v31, %v2499_v33  ;;  %v202_v56 = vld [vmem:[%s4839_s0 + $0x8] sm:$0xff]  ;;  %v2738_v16 = vor.u32 %v3100_v49, %v2737_v48  ;;  %v3057_v33 = vld [vmem:[%s4838_s4 + $0xd4] sm:$0xf]  ;;  %v2710_v49 = vor.u32 %v3091_v38, %v2707_v39  ;;  %v3099_v38 = vld [vmem:[%s4838_s4 + $0x224] sm:$0xf] }
  0xb6   :  { %1370 = vmatpush.bf16.msra.mxu2 %v2706_v43  ;;  %v2746_v43 = vor.u32 %v3102_v35, %v2745_v34  ;;  %v2467_v31 = vld [vmem:[%s4838_s4 + $0x8] sm:$0xf0]  ;;  %v3073_v35 = vld [vmem:[%s4838_s4 + $0x154] sm:$0xf]  ;;  %v3111_v39 = vld [vmem:[%s4838_s4 + $0x284] sm:$0xf] }
  0xb7   :  { %1338 = vmatmul.bf16.vlgmr.msrb.gmra.mxu3 %v4094_v63  ;;  %v3101_v27 = vld [vmem:[%s4838_s4 + $0x234] sm:$0xf]  ;;  %v2667_v45 = vld [vmem:[%s4838_s4 + $0x198] sm:$0xf0] }
  0xb8   :  { %1382 = vmatpush.bf16.msra.mxu3 %v2778_v57  ;;  %1351 = vmatmul.bf16.vlgmr.msra.gmra.mxu0 %v4096_v0  ;;  %v4211_v57 = vpack.c.b16 %v904_v41, %v904_v41  ;;  %v2574_v41 = vor.u32 %v3057_v33, %v2571_v32  ;;  %v3047_v33 = vld [vmem:[%s4838_s4 + $0x84] sm:$0xf] }
  0xb9   :  { %1402 = vmatpush.bf16.msrb.mxu0 %v2786_v59  ;;  %1358 = vmatpush.bf16.msra.mxu1 %v2634_v62  ;;  %v3035_v59 = vld [vmem:[%s4838_s4 + $0x24] sm:$0xf]  ;;  %v2587_v62 = vld [vmem:[%s4838_s4 + $0xf8] sm:$0xf0] }
  0xba   :  { %1371 = vmatpush.bf16.msra.mxu2 %v2698_v46  ;;  %v3077_v46 = vld [vmem:[%s4838_s4 + $0x174] sm:$0xf]  ;;  %v2590_v8 = vor.u32 %v3061_v60, %v2587_v62  ;;  %v2486_v13 = vor.u32 %v3035_v59, %v2483_v1 }
  0xbb   :  { %v2654_v9 = vor.u32 %v3077_v46, %v2651_v44  ;;  %v3053_v60 = vld [vmem:[%s4838_s4 + $0xb4] sm:$0xf]  ;;  %v2619_v44 = vld [vmem:[%s4838_s4 + $0x138] sm:$0xf0] }
  0xbc   :  { %1383 = vmatpush.bf16.msra.mxu3 %v2770_v5  ;;  %v902_v5 = vunpack.c.h.b16 %v202_v56  ;;  %v3069_v46 = vld [vmem:[%s4838_s4 + $0x134] sm:$0xf] }
  0xbd   :  { %1408 = vmatpush.bf16.msra.mxu0 %v2526_v4  ;;  %1359 = vmatpush.bf16.msra.mxu1 %v2626_v11  ;;  %v901_v4 = vunpack.c.l.b16 %v202_v56  ;;  %v3033_v11 = vld [vmem:[%s4838_s4 + $0x14] sm:$0xf]  ;;  %v2699_v56 = vld [vmem:[%s4838_s4 + $0x1d8] sm:$0xf0] }
  0xbe   :  { %1372 = vmatpush.bf16.msra.mxu2 %v2690_v12  ;;  %v3059_v12 = vld [vmem:[%s4838_s4 + $0xe4] sm:$0xf]  ;;  %v4259_v19 = vpack.c.b16 %v902_v5, %v902_v5  ;;  %v2702_v62 = vor.u32 %v3089_v55, %v2699_v56  ;;  %v3105_v1 = vld [vmem:[%s4838_s4 + $0x254] sm:$0xf]  ;;  %v2659_v56 = vld [vmem:[%s4838_s4 + $0x188] sm:$0xf0] }
  0xbf   :  { %v2582_v25 = vor.u32 %v3059_v12, %v2579_v15  ;;  %v2611_v12 = vld [vmem:[%s4838_s4 + $0x128] sm:$0xf0]  ;;  %v3085_v15 = vld [vmem:[%s4838_s4 + $0x1b4] sm:$0xf]  ;;  %v3079_v55 = vld [vmem:[%s4838_s4 + $0x184] sm:$0xf] }
  0xc0   :  { %1384 = vmatpush.bf16.msra.mxu3 %v2762_v51  ;;  %v4257_v51 = vpack.c.b16 %v901_v4, %v901_v4  ;;  %v2691_v4 = vld [vmem:[%s4838_s4 + $0x1c8] sm:$0xf0] }
  0xc1   :  { %1409 = vmatpush.bf16.msra.mxu0 %v2518_v18  ;;  %1360 = vmatpush.bf16.msra.mxu1 %v2618_v22  ;;  %v2643_v18 = vld [vmem:[%s4838_s4 + $0x168] sm:$0xf0]  ;;  %v3093_v22 = vld [vmem:[%s4838_s4 + $0x1f4] sm:$0xf] }
  0xc2   :  { %1373 = vmatpush.bf16.msra.mxu2 %v2682_v24  ;;  %v2715_v24 = vld [vmem:[%s4838_s4 + $0x1f8] sm:$0xf0]  ;;  %v2646_v26 = vor.u32 %v3075_v17, %v2643_v18 }
  0xc3   :  { %v2718_v34 = vor.u32 %v3093_v22, %v2715_v24  ;;  %v2683_v17 = vld [vmem:[%s4838_s4 + $0x1b8] sm:$0xf0] }
  0xc4   :  { %1385 = vmatpush.bf16.msra.mxu3 %v2754_v30  ;;  %v2722_v30 = vor.u32 %v3096_v10, %v2721_v21  ;;  %v3049_v21 = vld [vmem:[%s4838_s4 + $0x94] sm:$0xf]  ;;  %v2539_v10 = vld [vmem:[%s4838_s4 + $0x98] sm:$0xf0]  ;;  %v2686_v24 = vor.u32 %v3085_v15, %v2683_v17 }
  0xc5   :  { %1410 = vmatpush.bf16.msra.mxu0 %v2510_v29  ;;  %1361 = vmatpush.bf16.msra.mxu1 %v2610_v23  ;;  %v2478_v29 = vor.u32 %v3033_v11, %v2475_v20  ;;  %v2635_v23 = vld [vmem:[%s4838_s4 + $0x158] sm:$0xf0]  ;;  %v2694_v11 = vor.u32 %v3087_v3, %v2691_v4 }
  0xc6   :  { %1374 = vmatpush.bf16.msra.mxu2 %v2674_v36  ;;  %v3109_v36 = vld [vmem:[%s4838_s4 + $0x274] sm:$0xf] }
  0xc7   :  { %v2782_v48 = vor.u32 %v3109_v36, %v2779_v37 }
  0xc8   :  { %1386 = vmatpush.bf16.msra.mxu3 %v2746_v43  ;;  %2791 = vmatmul.msk.bf16.vlgmr.msrb.gmra.mxu0 %vm1326_vm1, %v4211_v57  ;;  %v2638_v43 = vor.u32 %v3073_v35, %v2635_v23  ;;  %v3063_v35 = vld [vmem:[%s4838_s4 + $0x104] sm:$0xf]  ;;  %v2595_v23 = vld [vmem:[%s4838_s4 + $0x108] sm:$0xf0] }
  0xc9   :  { %1411 = vmatpush.bf16.msra.mxu0 %v2502_v42  ;;  %1362 = vmatpush.bf16.msra.mxu1 %v2602_v52  ;;  %v2470_v42 = vor.u32 %v3031_v28, %v2467_v31  ;;  %v2627_v52 = vld [vmem:[%s4838_s4 + $0x148] sm:$0xf0]  ;;  %v2747_v28 = vld [vmem:[%s4838_s4 + $0x238] sm:$0xf0]  ;;  %v2542_v31 = vor.u32 %v3049_v21, %v2539_v10  ;;  %v3203_v21 = vld [vmem:[%s4840_s7 + $0x50] sm:$0xf0] }
  0xca   :  { %1375 = vmatpush.bf16.msra.mxu2 %v2666_v53  ;;  %v3107_v53 = vld [vmem:[%s4838_s4 + $0x264] sm:$0xf]  ;;  %v2630_v59 = vor.u32 %v3071_v50, %v2627_v52  ;;  %v2750_v36 = vor.u32 %v3101_v27, %v2747_v28  ;;  %v2819_v27 = vld [vmem:[%s4840_s7 + $0x30] sm:$0xf] }
  0xcc   :  { %1387 = vmatpush.bf16.msra.mxu3 %v2738_v16  ;;  %v2774_v16 = vor.u32 %v3107_v53, %v2771_v54  ;;  %v3097_v53 = vld [vmem:[%s4838_s4 + $0x214] sm:$0xf]  ;;  %v2731_v54 = vld [vmem:[%s4838_s4 + $0x218] sm:$0xf0] }
  0xcd   :  { %1412 = vmatpush.bf16.msra.mxu0 %v2494_v61  ;;  %1363 = vmatpush.bf16.msra.mxu1 %v2594_v6  ;;  %v2555_v61 = vld [vmem:[%s4838_s4 + $0xb8] sm:$0xf0]  ;;  %v2622_v6 = vor.u32 %v3069_v46, %v2619_v44  ;;  %v2879_v46 = vld [vmem:[%s4840_s7 + $0xa8] sm:$0xf] }
  0xce   :  { %1376 = vmatpush.bf16.msra.mxu2 %v2658_v7  ;;  %v2558_v5 = vor.u32 %v3053_v60, %v2555_v61  ;;  %v3051_v7 = vld [vmem:[%s4838_s4 + $0xa4] sm:$0xf]  ;;  %v2723_v61 = vld [vmem:[%s4838_s4 + $0x208] sm:$0xf0] }
  0xcf   :  { %v3095_v60 = vld [vmem:[%s4838_s4 + $0x204] sm:$0xf] }
  0xd0   :  { %1388 = vmatpush.bf16.msra.mxu3 %v2730_v14  ;;  %1364 = vmatmul.bf16.vlgmr.msra.gmra.mxu1 %v4257_v51  ;;  %v2755_v14 = vld [vmem:[%s4838_s4 + $0x248] sm:$0xf0] }
  0xd1   :  { %1421 = vmatpush.bf16.msrb.mxu1 %v2590_v8  ;;  %1413 = vmatpush.bf16.msra.mxu0 %v2486_v13  ;;  %v2547_v8 = vld [vmem:[%s4838_s4 + $0xa8] sm:$0xf0]  ;;  %v3103_v13 = vld [vmem:[%s4838_s4 + $0x244] sm:$0xf] }
  0xd2   :  { %1434 = vmatpush.bf16.msrb.mxu2 %v2654_v9  ;;  %v2766_v9 = vor.u32 %v3105_v1, %v2763_v2  ;;  %v2550_v18 = vor.u32 %v3051_v7, %v2547_v8  ;;  %v2758_v22 = vor.u32 %v3103_v13, %v2755_v14  ;;  %v2881_v13 = vld [vmem:[%s4840_s7 + $0xb4] sm:$0xf0] }
  0xd3   :  { %1377 = vmatmul.bf16.vlgmr.msra.gmra.mxu2 %v4259_v19 }
  0xd4   :  { %1389 = vmatpush.bf16.msra.mxu3 %v2722_v30  ;;  %v2675_v30 = vld [vmem:[%s4838_s4 + $0x1a8] sm:$0xf0] }
  0xd5   :  { %1422 = vmatpush.bf16.msrb.mxu1 %v2582_v25  ;;  %1414 = vmatpush.bf16.msra.mxu0 %v2478_v29  ;;  %v3065_v25 = vld [vmem:[%s4838_s4 + $0x114] sm:$0xf]  ;;  %v3083_v29 = vld [vmem:[%s4838_s4 + $0x1a4] sm:$0xf] }
  0xd6   :  { %1435 = vmatpush.bf16.msrb.mxu2 %v2646_v26  ;;  %v2603_v26 = vld [vmem:[%s4838_s4 + $0x118] sm:$0xf0]  ;;  %v2678_v37 = vor.u32 %v3083_v29, %v2675_v30 }
  0xd7   :  { %1390 = vmatmul.bf16.vlgmr.msra.gmra.mxu3 %v4309_v40  ;;  %v2606_v32 = vor.u32 %v3065_v25, %v2603_v26  ;;  %v3211_v25 = vld [vmem:[%s4840_s7 + $0x94] sm:$0xf]  ;;  %v2869_v26 = vld [vmem:[%s4840_s7 + $0x9c] sm:$0xf0]  ;;  %v3200_v29 = vld [vmem:[%s4840_s7 + $0x38] sm:$0xf0] }
  0xd8   :  { %1447 = vmatpush.bf16.msrb.mxu3 %v2718_v34  ;;  %v2531_v34 = vld [vmem:[%s4838_s4 + $0x88] sm:$0xf0]  ;;  %v2872_v28 = vor.u32 %v3211_v25, %v2869_v26  ;;  %v2820_v30 = vor.u32 %v3200_v29, %v2819_v27  ;;  %v2797_v25 = vld [vmem:[%s4840_s7 + $0xc] sm:$0xf0]  ;;  %v2851_v26 = vld [vmem:[%s4840_s7 + $0x68] sm:$0xf] }
  0xd9   :  { %1423 = vmatpush.bf16.msrb.mxu1 %v2574_v41  ;;  %1415 = vmatpush.bf16.msra.mxu0 %v2470_v42  ;;  %v2787_v41 = vld [vmem:[%s4838_s4 + $0x288] sm:$0xf0]  ;;  %v2534_v47 = vor.u32 %v3047_v33, %v2531_v34  ;;  %v2857_v33 = vld [vmem:[%s4840_s7 + $0x84] sm:$0xf0] }
  0xda   :  { %1436 = vmatpush.bf16.msrb.mxu2 %v2638_v43  ;;  %v2739_v42 = vld [vmem:[%s4838_s4 + $0x228] sm:$0xf0]  ;;  %v3081_v43 = vld [vmem:[%s4838_s4 + $0x194] sm:$0xf] }
  0xdb   :  { %v2742_v50 = vor.u32 %v3099_v38, %v2739_v42  ;;  %v2670_v52 = vor.u32 %v3081_v43, %v2667_v45  ;;  %v3205_v42 = vld [vmem:[%s4840_s7 + $0x64] sm:$0xf]  ;;  %v2845_v43 = vld [vmem:[%s4840_s7 + $0x6c] sm:$0xf0] }
  0xdc   :  { %1448 = vmatpush.bf16.msrb.mxu3 %v2710_v49  ;;  %1416 = vmatmul.bf16.vlgmr.msra.gmra.mxu0 %v4094_v63  ;;  %v3067_v63 = vld [vmem:[%s4838_s4 + $0x124] sm:$0xf]  ;;  %v2790_v49 = vor.u32 %v3111_v39, %v2787_v41 }
  0xdd   :  { %1460 = vmatpush.bf16.msrb.mxu0 %v2782_v48  ;;  %1424 = vmatpush.bf16.msrb.mxu1 %v2566_v58  ;;  %v2614_v20 = vor.u32 %v3067_v63, %v2611_v12  ;;  %v2598_v48 = vor.u32 %v3063_v35, %v2595_v23  ;;  %v2734_v58 = vor.u32 %v3097_v53, %v2731_v54  ;;  %v3206_v63 = vld [vmem:[%s4840_s7 + $0x68] sm:$0xf0]  ;;  %v2833_v53 = vld [vmem:[%s4840_s7 + $0x54] sm:$0xf0]  ;;  %v2887_v54 = vld [vmem:[%s4840_s7 + $0xb0] sm:$0xf] }
  0xde   :  { %1437 = vmatpush.bf16.msrb.mxu2 %v2630_v59  ;;  %v2662_v59 = vor.u32 %v3079_v55, %v2659_v56  ;;  %v3214_v12 = vld [vmem:[%s4840_s7 + $0xac] sm:$0xf] }
  0xdf   :  { %v2884_v15 = vor.u32 %v3214_v12, %v2881_v13  ;;  %v2863_v12 = vld [vmem:[%s4840_s7 + $0x80] sm:$0xf] }
  0xe0   :  { %1449 = vmatpush.bf16.msrb.mxu3 %v2702_v62 }
  0xe1   :  { %1461 = vmatpush.bf16.msrb.mxu0 %v2774_v16  ;;  %1425 = vmatpush.bf16.msrb.mxu1 %v2558_v5  ;;  %v2726_v16 = vor.u32 %v3095_v60, %v2723_v61  ;;  %v2855_v5 = vld [vmem:[%s4840_s7 + $0x78] sm:$0xf]  ;;  %v2975_v60 = vld [vmem:[%s4840_s7 + $0x168] sm:$0xf]  ;;  %v3239_v61 = vld [vmem:[%s4840_s7 + $0x170] sm:$0xf0] }
  0xe2   :  { %1438 = vmatpush.bf16.msrb.mxu2 %v2622_v6  ;;  %v3209_v6 = vld [vmem:[%s4840_s7 + $0x80] sm:$0xf0] }
  0xe4   :  { %1450 = vmatpush.bf16.msrb.mxu3 %v2694_v11  ;;  %v2843_v11 = vld [vmem:[%s4840_s7 + $0x60] sm:$0xf] }
  0xe5   :  { %1462 = vmatpush.bf16.msrb.mxu0 %v2766_v9  ;;  %1426 = vmatpush.bf16.msrb.mxu1 %v2550_v18  ;;  %v2856_v9 = vor.u32 %v3209_v6, %v2855_v5  ;;  %v2844_v14 = vor.u32 %v3206_v63, %v2843_v11  ;;  %v2963_v6 = vld [vmem:[%s4840_s7 + $0x150] sm:$0xf]  ;;  %v3196_v11 = vld [vmem:[%s4840_s7 + $0x1c] sm:$0xf]  ;;  %v2809_v63 = vld [vmem:[%s4840_s7 + $0x24] sm:$0xf0] }
  0xe6   :  { %1439 = vmatpush.bf16.msrb.mxu2 %v2614_v20  ;;  %v2831_v20 = vld [vmem:[%s4840_s7 + $0x48] sm:$0xf]  ;;  %v2812_v13 = vor.u32 %v3196_v11, %v2809_v63  ;;  %v3195_v63 = vld [vmem:[%s4840_s7 + $0x10] sm:$0xf0] }
  0xe7   :  { %v2803_v11 = vld [vmem:[%s4840_s7 + $0x8] sm:$0xf] }
  0xe8   :  { %1451 = vmatpush.bf16.msrb.mxu3 %v2686_v24  ;;  %v2832_v24 = vor.u32 %v3203_v21, %v2831_v20  ;;  %v3233_v20 = vld [vmem:[%s4840_s7 + $0x140] sm:$0xf0] }
  0xe9   :  { %1463 = vmatpush.bf16.msrb.mxu0 %v2758_v22  ;;  %1427 = vmatpush.bf16.msrb.mxu1 %v2542_v31  ;;  %v3208_v31 = vld [vmem:[%s4840_s7 + $0x7c] sm:$0xf] }
  0xea   :  { %1440 = vmatpush.bf16.msrb.mxu2 %v2606_v32  ;;  %v2860_v34 = vor.u32 %v3208_v31, %v2857_v33  ;;  %v3230_v31 = vld [vmem:[%s4840_s7 + $0x128] sm:$0xf0] }
  0xec   :  { %1452 = vmatpush.bf16.msrb.mxu3 %v2678_v37  ;;  %v3197_v37 = vld [vmem:[%s4840_s7 + $0x20] sm:$0xf0] }
  0xed   :  { %1464 = vmatpush.bf16.msrb.mxu0 %v2750_v36  ;;  %1428 = vmatpush.bf16.msrb.mxu1 %v2534_v47  ;;  %v2807_v36 = vld [vmem:[%s4840_s7 + $0x18] sm:$0xf]  ;;  %v2848_v47 = vor.u32 %v3205_v42, %v2845_v43  ;;  %v3227_v42 = vld [vmem:[%s4840_s7 + $0x110] sm:$0xf0] }
  0xee   :  { %1441 = vmatpush.bf16.msrb.mxu2 %v2598_v48  ;;  %v2808_v41 = vor.u32 %v3197_v37, %v2807_v36  ;;  %v2795_v48 = vld [vmem:[%s4840_s7] sm:$0xf]  ;;  %v3204_v36 = vld [vmem:[%s4840_s7 + $0x58] sm:$0xf0]  ;;  %v3235_v43 = vld [vmem:[%s4840_s7 + $0x154] sm:$0xf] }
  0xf0   :  { %1453 = vmatpush.bf16.msrb.mxu3 %v2670_v52  ;;  %1429 = vmatmul.bf16.vlgmr.msrb.gmra.mxu1 %v4096_v0  ;;  %v3202_v52 = vld [vmem:[%s4840_s7 + $0x4c] sm:$0xf] }
  0xf1   :  { %1480 = vmatpush.bf16.msra.mxu1 %v2790_v49  ;;  %1465 = vmatpush.bf16.msrb.mxu0 %v2742_v50  ;;  %v3194_v49 = vld [vmem:[%s4840_s7 + $0x8] sm:$0xf0]  ;;  %v2836_v56 = vor.u32 %v3202_v52, %v2833_v53 }
  0xf2   :  { %1442 = vmatmul.bf16.vlgmr.msrb.gmra.mxu2 %v4257_v51  ;;  %v3215_v51 = vld [vmem:[%s4840_s7 + $0xb0] sm:$0xf0]  ;;  %v2796_v50 = vor.u32 %v3194_v49, %v2795_v48  ;;  %v3201_v49 = vld [vmem:[%s4840_s7 + $0x40] sm:$0xf0] }
  0xf3   :  { %v2880_v1 = vor.u32 %v3215_v51, %v2879_v46 }
  0xf4   :  { %1454 = vmatpush.bf16.msrb.mxu3 %v2662_v59 }
  0xf5   :  { %1466 = vmatpush.bf16.msrb.mxu0 %v2734_v58  ;;  %1826 = vmatpush.bf16.msra.mxu2 %v2880_v1  ;;  %v3216_v58 = vld [vmem:[%s4840_s7 + $0xb8] sm:$0xf0]  ;;  %v2821_v1 = vld [vmem:[%s4840_s7 + $0x3c] sm:$0xf0] }
  0xf6   :  { %1852 = vmatpush.bf16.msrb.mxu1 %v2884_v15  ;;  %v2888_v59 = vor.u32 %v3216_v58, %v2887_v54 }
  0xf7   :  { %1455 = vmatmul.bf16.vlgmr.msrb.gmra.mxu3 %v4259_v19 }
  0xf9   :  { %1467 = vmatpush.bf16.msrb.mxu0 %v2726_v16  ;;  %v2976_v16 = vor.u32 %v3239_v61, %v2975_v60  ;;  %v2953_v60 = vld [vmem:[%s4840_s7 + $0x144] sm:$0xf0] }
  0xfa   :  { %1853 = vmatpush.bf16.msrb.mxu1 %v2872_v28  ;;  %v3207_v28 = vld [vmem:[%s4840_s7 + $0x70] sm:$0xf0] }
  0xfb   :  { %1839 = vmatpush.bf16.msra.mxu3 %v2976_v16  ;;  %v2852_v29 = vor.u32 %v3207_v28, %v2851_v26  ;;  %v2815_v16 = vld [vmem:[%s4840_s7 + $0x20] sm:$0xf] }
  0xfc   :  { %1468 = vmatmul.bf16.vlgmr.msrb.gmra.mxu0 %v4309_v40  ;;  %v3212_v40 = vld [vmem:[%s4840_s7 + $0x98] sm:$0xf0]  ;;  %v4723_v26 = vld [vmem:[%s4841_s6] sm:$0x3] }
  0xfe   :  { %1854 = vmatpush.bf16.msrb.mxu1 %v2860_v34  ;;  %v2977_v34 = vld [vmem:[%s4840_s7 + $0x174] sm:$0xf0] }
 0x100   :  { %2792 = vmatmul.msk.bf16.vlgmr.msra.gmra.mxu1 %vm1326_vm1, %v4211_v57  ;;  %v2867_v57 = vld [vmem:[%s4840_s7 + $0x90] sm:$0xf] }
 0x101   :  { %v2868_v2 = vor.u32 %v3212_v40, %v2867_v57  ;;  %v2875_v57 = vld [vmem:[%s4840_s7 + $0x98] sm:$0xf] }
 0x102   :  { %1855 = vmatpush.bf16.msrb.mxu1 %v2848_v47 }
 0x103   :  { %1827 = vmatpush.bf16.msra.mxu2 %v2868_v2 }
 0x106   :  { %1856 = vmatpush.bf16.msrb.mxu1 %v2836_v56  ;;  %v3224_v56 = vld [vmem:[%s4840_s7 + $0xf8] sm:$0xf0] }
 0x107   :  { %1828 = vmatpush.bf16.msra.mxu2 %v2856_v9 }
 0x10b   :  { %1829 = vmatpush.bf16.msra.mxu2 %v2844_v14  ;;  %v3210_v14 = vld [vmem:[%s4840_s7 + $0x88] sm:$0xf0] }
 0x10c   :  { %v4463_v0 = vpop.f32.mrf.mxu1 }
 0x10f   :  { %1830 = vmatpush.bf16.msra.mxu2 %v2832_v24  ;;  %v3193_v24 = vld [vmem:[%s4840_s7 + $0x4] sm:$0xf] }
 0x110   :  { %v2800_v27 = vor.u32 %v3193_v24, %v2797_v25 }
 0x113   :  { %v4465_v62 = vpop.f32.mrf.mxu2  ;;  %1831 = vmatpush.bf16.msra.mxu2 %v2820_v30  ;;  %v2939_v30 = vld [vmem:[%s4840_s7 + $0x120] sm:$0xf] }
 0x114   :  { %v777_v19 = vpop.f32.mrf.mxu1  ;;  %v2940_v33 = vor.u32 %v3230_v31, %v2939_v30  ;;  %v789_v37 = vadd.f32 %v4465_v62, %v4463_v0  ;;  %v2965_v0 = vld [vmem:[%s4840_s7 + $0x15c] sm:$0xf0]  ;;  %v2827_v62 = vld [vmem:[%s4840_s7 + $0x38] sm:$0xf] }
 0x115   :  { %v4473_v44 = vpop.f32.mrf.mxu0  ;;  %v3199_v19 = vld [vmem:[%s4840_s7 + $0x34] sm:$0xf]  ;;  %v2968_v52 = vor.u32 %v3235_v43, %v2965_v0  ;;  %v2828_v54 = vor.u32 %v3201_v49, %v2827_v62  ;;  %v2917_v30 = vld [vmem:[%s4840_s7 + $0xfc] sm:$0xf0] }
 0x116   :  { %v2824_v2 = vor.u32 %v3199_v19, %v2821_v1  ;;  %v3198_v19 = vld [vmem:[%s4840_s7 + $0x28] sm:$0xf0] }
 0x117   :  { %1832 = vmatpush.bf16.msra.mxu2 %v2808_v41  ;;  %v2927_v41 = vld [vmem:[%s4840_s7 + $0x108] sm:$0xf]  ;;  %v2816_v1 = vor.u32 %v3198_v19, %v2815_v16  ;;  %v3228_v16 = vld [vmem:[%s4840_s7 + $0x118] sm:$0xf0] }
 0x118   :  { %1857 = vmatpush.bf16.msrb.mxu1 %v2824_v2  ;;  %v2928_v48 = vor.u32 %v3227_v42, %v2927_v41  ;;  %v2905_v41 = vld [vmem:[%s4840_s7 + $0xe4] sm:$0xf0]  ;;  %v2959_v42 = vld [vmem:[%s4840_s7 + $0x140] sm:$0xf] }
 0x11a   :  { %v4481_v3 = vpop.f32.mrf.mxu3 }
 0x11b   :  { %v790_v4 = vpop.f32.mrf.mxu2  ;;  %1833 = vmatpush.bf16.msra.mxu2 %v2796_v50  ;;  %v802_v50 = vadd.f32 %v4481_v3, %v789_v37  ;;  %v3232_v3 = vld [vmem:[%s4840_s7 + $0x13c] sm:$0xf] }
 0x11c   :  { %v4489_v8 = vpop.f32.mrf.mxu1  ;;  %v3213_v4 = vld [vmem:[%s4840_s7 + $0xa0] sm:$0xf0]  ;;  %1858 = vmatpush.bf16.msrb.mxu1 %v2812_v13  ;;  %v2956_v61 = vor.u32 %v3232_v3, %v2953_v60  ;;  %v2891_v13 = vld [vmem:[%s4840_s7 + $0xc0] sm:$0xf] }
 0x11d   :  { %v816_v7 = vpop.f32.mrf.mxu0  ;;  %v2876_v5 = vor.u32 %v3213_v4, %v2875_v57  ;;  %v815_v58 = vadd.f32 %v4473_v44, %v802_v50  ;;  %v2903_v44 = vld [vmem:[%s4840_s7 + $0xd8] sm:$0xf]  ;;  %v3221_v57 = vld [vmem:[%s4840_s7 + $0xe0] sm:$0xf0] }
 0x11e   :  { %v3236_v7 = vld [vmem:[%s4840_s7 + $0x158] sm:$0xf0]  ;;  %v2904_v2 = vor.u32 %v3221_v57, %v2903_v44  ;;  %v3217_v50 = vld [vmem:[%s4840_s7 + $0xc4] sm:$0xf]  ;;  %v2923_v44 = vld [vmem:[%s4840_s7 + $0xf8] sm:$0xf] }
 0x11f   :  { %1878 = vmatpush.bf16.msrb.mxu2 %v2888_v59  ;;  %v2964_v9 = vor.u32 %v3236_v7, %v2963_v6  ;;  %v828_v4 = vadd.f32 %v4489_v8, %v815_v58  ;;  %v2941_v6 = vld [vmem:[%s4840_s7 + $0x12c] sm:$0xf0] }
 0x120   :  { %1859 = vmatpush.bf16.msrb.mxu1 %v2800_v27 }
 0x121   :  { %1840 = vmatpush.bf16.msra.mxu3 %v2964_v9 }
 0x122   :  { %v803_v17 = vpop.f32.mrf.mxu3 }
 0x123   :  { %v840_v18 = vpop.f32.mrf.mxu2  ;;  %1879 = vmatpush.bf16.msrb.mxu2 %v2876_v5  ;;  %v2864_v17 = vor.u32 %v3210_v14, %v2863_v12  ;;  %v3229_v5 = vld [vmem:[%s4840_s7 + $0x124] sm:$0xf]  ;;  %v2804_v12 = vor.u32 %v3195_v63, %v2803_v11  ;;  %v3218_v14 = vld [vmem:[%s4840_s7 + $0xc8] sm:$0xf0] }
 0x124   :  { %v829_v22 = vpop.f32.mrf.mxu1  ;;  %v2944_v9 = vor.u32 %v3229_v5, %v2941_v6  ;;  %v2899_v6 = vld [vmem:[%s4840_s7 + $0xc8] sm:$0xf] }
 0x125   :  { %v866_v10 = vpop.f32.mrf.mxu0 }
 0x127   :  { %1880 = vmatpush.bf16.msrb.mxu2 %v2864_v17  ;;  %v2892_v17 = vor.u32 %v3218_v14, %v2891_v13 }
 0x12a   :  { %v853_v32 = vpop.f32.mrf.mxu3 }
 0x12b   :  { %v854_v35 = vadd.f32 %v853_v32, %v840_v18  ;;  %v842_v23 = vpop.f32.mrf.mxu2  ;;  %v2951_v18 = vld [vmem:[%s4840_s7 + $0x138] sm:$0xf]  ;;  %v3238_v32 = vld [vmem:[%s4840_s7 + $0x16c] sm:$0xf]  ;;  %1881 = vmatpush.bf16.msrb.mxu2 %v2852_v29  ;;  %v3223_v29 = vld [vmem:[%s4840_s7 + $0xf4] sm:$0xf] }
 0x12c   :  { %v2952_v21 = vor.u32 %v3233_v20, %v2951_v18  ;;  %v2839_v23 = vld [vmem:[%s4840_s7 + $0x50] sm:$0xf]  ;;  %v3226_v18 = vld [vmem:[%s4840_s7 + $0x10c] sm:$0xf] }
 0x12d   :  { %v868_v38 = vpop.f32.mrf.mxu0  ;;  %v4533_v39 = vadd.f32 %v866_v10, %v854_v35  ;;  %v4541_v45 = vpop.f32.mrf.mxu1  ;;  %v2980_v35 = vor.u32 %v3238_v32, %v2977_v34  ;;  %v2983_v20 = vld [vmem:[%s4840_s7 + $0x170] sm:$0xf]  ;;  %v3237_v32 = vld [vmem:[%s4840_s7 + $0x160] sm:$0xf0] }
 0x12e   :  { %1841 = vmatpush.bf16.msra.mxu3 %v2952_v21  ;;  %v2840_v38 = vor.u32 %v3204_v36, %v2839_v23  ;;  %v1488_v36 = vperm.slane %v4723_v26, 0 }
 0x12f   :  { %1865 = vmatpush.bf16.msra.mxu0 %v2980_v35 }
 0x130   :  { %1882 = vmatpush.bf16.msrb.mxu2 %v2840_v38  ;;  %v3220_v38 = vld [vmem:[%s4840_s7 + $0xdc] sm:$0xf] }
 0x132   :  { %v855_v55 = vpop.f32.mrf.mxu3  ;;  %1842 = vmatpush.bf16.msra.mxu3 %v2940_v33  ;;  %v2920_v33 = vor.u32 %v3223_v29, %v2917_v30 }
 0x133   :  { %1866 = vmatpush.bf16.msra.mxu0 %v2968_v52  ;;  %v2915_v55 = vld [vmem:[%s4840_s7 + $0xf0] sm:$0xf] }
 0x134   :  { %v2916_v59 = vor.u32 %v3224_v56, %v2915_v55  ;;  %1883 = vmatpush.bf16.msrb.mxu2 %v2828_v54  ;;  %v2893_v52 = vld [vmem:[%s4840_s7 + $0xcc] sm:$0xf0]  ;;  %v2947_v54 = vld [vmem:[%s4840_s7 + $0x128] sm:$0xf] }
 0x135   :  { %v4569_v51 = vpop.f32.mrf.mxu0  ;;  %v881_v40 = vpop.f32.mrf.mxu1  ;;  %v2896_v56 = vor.u32 %v3217_v50, %v2893_v52 }
 0x136   :  { %v4567_v46 = vpop.f32.mrf.mxu2  ;;  %1843 = vmatpush.bf16.msra.mxu3 %v2928_v48  ;;  %v3234_v48 = vld [vmem:[%s4840_s7 + $0x148] sm:$0xf0] }
 0x137   :  { %1867 = vmatpush.bf16.msra.mxu0 %v2956_v61  ;;  %v2960_v62 = vor.u32 %v3234_v48, %v2959_v42  ;;  %v2935_v61 = vld [vmem:[%s4840_s7 + $0x110] sm:$0xf] }
 0x138   :  { %1884 = vmatpush.bf16.msrb.mxu2 %v2816_v1  ;;  %v2936_v19 = vor.u32 %v3228_v16, %v2935_v61  ;;  %v3225_v1 = vld [vmem:[%s4840_s7 + $0x100] sm:$0xf0] }
 0x139   :  { %v2924_v57 = vor.u32 %v3225_v1, %v2923_v44 }
 0x13a   :  { %v4601_v15 = vpop.f32.mrf.mxu3  ;;  %1844 = vmatpush.bf16.msra.mxu3 %v2916_v59 }
 0x13b   :  { %v1340_v8 = vadd.f32 %v4601_v15, %v828_v4  ;;  %1868 = vmatpush.bf16.msra.mxu0 %v2944_v9  ;;  %v2929_v15 = vld [vmem:[%s4840_s7 + $0x114] sm:$0xf0]  ;;  %v880_v9 = vadd.f32 %v4541_v45, %v4533_v39 }
 0x13c   :  { %1885 = vmatpush.bf16.msrb.mxu2 %v2804_v12 }
 0x13d   :  { %v1354_v22 = vpop.f32.mrf.mxu0  ;;  %v1353_v24 = vadd.f32 %v4569_v51, %v1340_v8  ;;  %v2971_v51 = vld [vmem:[%s4840_s7 + $0x158] sm:$0xf]  ;;  %v893_v63 = vadd.f32 %v4567_v46, %v880_v9 }
 0x13e   :  { %v894_v10 = vpop.f32.mrf.mxu2  ;;  %1845 = vmatpush.bf16.msra.mxu3 %v2904_v2  ;;  %v3240_v22 = vld [vmem:[%s4840_s7 + $0x178] sm:$0xf0]  ;;  %v2972_v35 = vor.u32 %v3237_v32, %v2971_v51  ;;  %v3222_v2 = vld [vmem:[%s4840_s7 + $0xe8] sm:$0xf0] }
 0x13f   :  { %v2932_v10 = vor.u32 %v3226_v18, %v2929_v15  ;;  %v2984_v25 = vor.u32 %v3240_v22, %v2983_v20  ;;  %v1489_v22 = vperm.slane %v4723_v26, 1  ;;  %v3248_v26 = vld [vmem:[%s4843_s9 + $0x38] sm:$0xff] }
 0x140   :  { %2016 = vmatpush.bf16.msra.mxu1 %v3248_v26 }
 0x141   :  { %1869 = vmatpush.bf16.msra.mxu0 %v2932_v10 }
 0x142   :  { %v1341_v47 = vpop.f32.mrf.mxu3  ;;  %1846 = vmatpush.bf16.msra.mxu3 %v2892_v17 }
 0x143   :  { %v2908_v47 = vor.u32 %v3220_v38, %v2905_v41  ;;  %v3246_v38 = vld [vmem:[%s4843_s9 + $0x28] sm:$0xff] }
 0x145   :  { %v4660_v53 = vpop.f32.mrf.mxu0  ;;  %1870 = vmatpush.bf16.msra.mxu0 %v2920_v33 }
 0x146   :  { %1891 = vmatpush.bf16.msrb.mxu3 %v2984_v25 }
 0x149   :  { %1871 = vmatpush.bf16.msra.mxu0 %v2908_v47  ;;  %v3245_v47 = vld [vmem:[%s4843_s9 + $0x20] sm:$0xff] }
 0x14a   :  { %1892 = vmatpush.bf16.msrb.mxu3 %v2972_v35  ;;  %v3247_v35 = vld [vmem:[%s4843_s9 + $0x30] sm:$0xff] }
 0x14b   :  { %2017 = vmatpush.bf16.msra.mxu1 %v3247_v35 }
 0x14d   :  { %v1365_v40 = vpop.f32.mrf.mxu1  ;;  %v1406_v7 = vpop.f32.mrf.mxu0  ;;  %1872 = vmatpush.bf16.msra.mxu0 %v2896_v56 }
 0x14e   :  { %v1366_v28 = vadd.f32 %v1365_v40, %v1353_v24  ;;  %1893 = vmatpush.bf16.msrb.mxu3 %v2960_v62  ;;  %v2911_v40 = vld [vmem:[%s4840_s7 + $0xe0] sm:$0xf]  ;;  %v3219_v7 = vld [vmem:[%s4840_s7 + $0xd0] sm:$0xf0]  ;;  %v3244_v62 = vld [vmem:[%s4843_s9 + $0x18] sm:$0xff] }
 0x14f   :  { %v2912_v5 = vor.u32 %v3222_v2, %v2911_v40  ;;  %v2900_v11 = vor.u32 %v3219_v7, %v2899_v6  ;;  %2018 = vmatpush.bf16.msra.mxu1 %v3246_v38 }
 0x153   :  { %2019 = vmatpush.bf16.msra.mxu1 %v3245_v47 }
 0x155   :  { %v1367_v27 = vpop.f32.mrf.mxu1 }
 0x156   :  { %v1378_v21 = vpop.f32.mrf.mxu2 }
 0x157   :  { %v1379_v34 = vadd.f32 %v1378_v21, %v1366_v28  ;;  %2020 = vmatpush.bf16.msra.mxu1 %v3244_v62 }
 0x159   :  { %v1417_v31 = vpop.f32.mrf.mxu0 }
 0x15a   :  { %v1391_v23 = vpop.f32.mrf.mxu3  ;;  %v1418_v8 = vadd.f32 %v1417_v31, %v893_v63 }
 0x15b   :  { %v1392_v37 = vadd.f32 %v1391_v23, %v1379_v34  ;;  %v1562_v23 = vld [vmem:[%s4844_s8] sm:$0x7] }
 0x15d   :  { %v1405_v0 = vadd.f32 %v4660_v53, %v1392_v37  ;;  %v3231_v53 = vld [vmem:[%s4840_s7 + $0x130] sm:$0xf0]  ;;  %v1564_v37 = vperm.slane %v1562_v23, 0 }
 0x15e   :  { %v1380_v43 = vpop.f32.mrf.mxu2  ;;  %v2948_v59 = vor.u32 %v3231_v53, %v2947_v54  ;;  %v1566_v54 = vperm.slane %v1562_v23, 2 }
 0x15f   :  { %v1492_v49 = vadd.f32 %v1488_v36, %v1405_v0 }
 0x160   :  { %1894 = vmatpush.bf16.msrb.mxu3 %v2948_v59 }
 0x161   :  { %v1419_v55 = vpop.f32.mrf.mxu0  ;;  %v1494_v58 = vmax.f32 %v1492_v49, 0.0  ;;  %v3243_v49 = vld [vmem:[%s4843_s9 + $0x10] sm:$0xff] }
 0x162   :  { %v1393_v3 = vpop.f32.mrf.mxu3  ;;  %2021 = vmatpush.bf16.msra.mxu1 %v3243_v49  ;;  %v3242_v55 = vld [vmem:[%s4843_s9 + $0x8] sm:$0xff] }
 0x163   :  { %v1496_v60 = vpack.c.bf16 %v1494_v58, %v1494_v58  ;;  %v3241_v58 = vld [vmem:[%s4843_s9] sm:$0xff]  ;;  %v2062_v49 = vld [vmem:[%s4845_s11 + $0x8] sm:$0xff] }
 0x164   :  { %1895 = vmatpush.bf16.msrb.mxu3 %v2936_v19  ;;  %2086 = vmatpush.msrb.mxu0 %v2062_v49 }
 0x165   :  { %1834 = vmatmul.bf16.vlgmr.msra.gmra.mxu2 %v1496_v60  ;;  %1860 = vmatmul.bf16.vlgmr.msrb.gmra.mxu1 %v1496_v60 }
 0x166   :  { %2022 = vmatpush.bf16.msra.mxu1 %v3242_v55 }
 0x168   :  { %1896 = vmatpush.bf16.msrb.mxu3 %v2924_v57 }
 0x16a   :  { %2023 = vmatpush.bf16.msra.mxu1 %v3241_v58 }
 0x16c   :  { %1897 = vmatpush.bf16.msrb.mxu3 %v2912_v5 }
 0x16d   :  { %v1430_v4 = vpop.f32.mrf.mxu1 }
 0x16e   :  { %v1431_v14 = vadd.f32 %v1430_v4, %v1418_v8 }
 0x170   :  { %1898 = vmatpush.bf16.msrb.mxu3 %v2900_v11 }
 0x175   :  { %v1443_v12 = vpop.f32.mrf.mxu2  ;;  %v1432_v13 = vpop.f32.mrf.mxu1  ;;  %1886 = vmatmul.bf16.vlgmr.msrb.gmra.mxu2 %v1496_v60  ;;  %v1565_v60 = vperm.slane %v1562_v23, 1 }
 0x176   :  { %v1444_v18 = vadd.f32 %v1443_v12, %v1431_v14 }
 0x179   :  { %v1469_v17 = vpop.f32.mrf.mxu0 }
 0x17a   :  { %v1456_v15 = vpop.f32.mrf.mxu3 }
 0x17b   :  { %v1457_v20 = vadd.f32 %v1456_v15, %v1444_v18 }
 0x17d   :  { %v1445_v21 = vpop.f32.mrf.mxu2  ;;  %v1470_v10 = vadd.f32 %v1469_v17, %v1457_v20  ;;  %v1482_v24 = vpop.f32.mrf.mxu1 }
 0x17f   :  { %v1483_v39 = vadd.f32 %v1482_v24, %v1470_v10 }
 0x181   :  { %v1471_v45 = vpop.f32.mrf.mxu0  ;;  %v1493_v25 = vadd.f32 %v1489_v22, %v1483_v39 }
 0x182   :  { %v1458_v27 = vpop.f32.mrf.mxu3 }
 0x183   :  { %v1495_v46 = vmax.f32 %v1493_v25, 0.0 }
 0x185   :  { %v1497_v28 = vpack.c.bf16 %v1495_v46, %v1495_v46  ;;  %v1484_v29 = vpop.f32.mrf.mxu1 }
 0x187   :  { %1847 = vmatmul.bf16.vlgmr.msra.gmra.mxu3 %v1497_v28  ;;  %1873 = vmatmul.bf16.vlgmr.msra.gmra.mxu0 %v1497_v28 }
 0x197   :  { %1899 = vmatmul.bf16.vlgmr.msrb.gmra.mxu3 %v1497_v28  ;;  %v3252_v28 = vld [vmem:[%s4842_s10] ss:$0 sm:$0xff]  ;;  %s3275_s10 = smov 32  }
 0x1e2   :  { %v1861_v30 = vpop.f32.mrf.mxu1 }
 0x1e3   :  { %v1862_v44 = vadd.f32 %v1861_v30, %v1565_v60 }
 0x1e8   :  { %v1835_v51 = vpop.f32.mrf.mxu2 }
 0x1e9   :  { %v1836_v41 = vadd.f32 %v1835_v51, %v1564_v37 }
 0x1ea   :  { %v1863_v31 = vpop.f32.mrf.mxu1 }
 0x1f0   :  { %v1837_v33 = vpop.f32.mrf.mxu2 }
 0x1f8   :  { %v1887_v32 = vpop.f32.mrf.mxu2 }
 0x1f9   :  { %v1888_v53 = vadd.f32 %v1887_v32, %v1566_v54 }
 0x200   :  { %v1889_v34 = vpop.f32.mrf.mxu2 }
 0x204   :  { %v1874_v36 = vpop.f32.mrf.mxu0 }
 0x205   :  { %v1875_v40 = vadd.f32 %v1874_v36, %v1862_v44 }
 0x20a   :  { %v1848_v42 = vpop.f32.mrf.mxu3 }
 0x20b   :  { %v1849_v43 = vadd.f32 %v1848_v42, %v1836_v41 }
 0x20c   :  { %v1876_v48 = vpop.f32.mrf.mxu0 }
 0x20d   :  { %v2985_v0 = vmul.f32 -1.442695, %v1849_v43 }
 0x20f   :  { %3254 = vpow2.f32 %v2985_v0 }
 0x212   :  { %v1850_v50 = vpop.f32.mrf.mxu3 }
 0x213   :  { %v2061_v50 = vld [vmem:[%s4845_s11] sm:$0xff] }
 0x214   :  { %2087 = vmatpush.msrb.mxu0 %v2061_v50 }
 0x215   :  { %v3255_v52 = vpop.eup %3254 }
 0x216   :  { %v1907_v56 = vadd.f32 1.0, %v3255_v52 }
 0x218   :  { %3256 = vrcp.f32 %v1907_v56  ;;  %v1919_v6 = vand.u32 2147483648, %v1907_v56  ;;  %vm1913_vm3 = vweird.f32 %v1907_v56  ;;  %v1917_v7 = vand.u32 2147483647, %v1907_v56 }
 0x21a   :  { %v1900_v59 = vpop.f32.mrf.mxu3  ;;  %v1920_v63 = vor.u32 1.1754944e-38, %v1919_v6  ;;  %vm1918_vm5 = vcmp.eq.f32.partialorder %v1917_v7, 8.507059e+37 }
 0x21b   :  { %v1901_v3 = vadd.f32 %v1900_v59, %v1888_v53  ;;  %v3253_v53 = vld [vmem:[%s4846_s12] ss:$0 sm:$0xff] }
 0x21d   :  { %v2986_v61 = vmul.f32 -1.442695, %v1901_v3 }
 0x21e   :  { %v3257_v16 = vpop.eup %3256 }
 0x21f   :  { %v1909_v19 = vmul.f32 %v3257_v16, %v1907_v56  ;;  %3258 = vpow2.f32 %v2986_v61  ;;  %vm1914_vm2 = vweird.f32 %v3257_v16 }
 0x220   :  { %3260 = vtanh.f32 %v1875_v40  ;;  %vm1915_vm4 = vmor %vm1913_vm3, %vm1914_vm2 }
 0x221   :  { %v1910_v1 = vsub.f32 1.0, %v1909_v19 }
 0x222   :  { %v1902_v57 = vpop.f32.mrf.mxu3 }
 0x223   :  { %v1911_v2 = vmul.f32 %v3257_v16, %v1910_v1 }
 0x225   :  { %v3259_v4 = vpop.eup %3258  ;;  %v1912_v5 = vadd.f32 %v3257_v16, %v1911_v2 }
 0x226   :  { %v1927_v9 = vadd.f32 1.0, %v3259_v4  ;;  %v3261_v12 = vpop.eup %3260 }
 0x227   :  { %v1916_v11 = vsel %vm1915_vm4, %v3257_v16, %v1912_v5 }
 0x228   :  { %3262 = vrcp.f32 %v1927_v9  ;;  %v1921_v8 = vsel %vm1918_vm5, %v1920_v63, %v1916_v11  ;;  %v1939_v15 = vand.u32 2147483648, %v1927_v9  ;;  %v1937_v21 = vand.u32 2147483647, %v1927_v9 }
 0x229   :  { %v1943_v14 = vmul.f32 %v3261_v12, %v1921_v8  ;;  %vm1933_vm7 = vweird.f32 %v1927_v9 }
 0x22a   :  { %v1940_v22 = vor.u32 1.1754944e-38, %v1939_v15  ;;  %vm1938_vm9 = vcmp.eq.f32.partialorder %v1937_v21, 8.507059e+37 }
 0x22b   :  { %3264 = vtanh.f32 %v1943_v14 }
 0x22e   :  { %v3263_v13 = vpop.eup %3262 }
 0x22f   :  { %v1929_v17 = vmul.f32 %v3263_v13, %v1927_v9  ;;  %vm1934_vm6 = vweird.f32 %v3263_v13 }
 0x230   :  { %vm1935_vm8 = vmor %vm1933_vm7, %vm1934_vm6 }
 0x231   :  { %v1930_v18 = vsub.f32 1.0, %v1929_v17  ;;  %v3265_v39 = vpop.eup %3264 }
 0x233   :  { %v1931_v20 = vmul.f32 %v3263_v13, %v1930_v18 }
 0x235   :  { %v1932_v10 = vadd.f32 %v3263_v13, %v1931_v20 }
 0x237   :  { %v1936_v24 = vsel %vm1935_vm8, %v3263_v13, %v1932_v10 }
 0x238   :  { %v1941_v45 = vsel %vm1938_vm9, %v1940_v22, %v1936_v24 }
 0x239   :  { %v1945_v25 = vmul.f32 %v3265_v39, %v1941_v45 }
 0x23b   :  { %v1946_v27 = vmax.f32 %v1945_v25, 0.0 }
 0x23d   :  { %v1947_v46 = vpack.c.bf16 %v1946_v27, %v1946_v27 }
 0x23f   :  { %2024 = vmatmul.bf16.vlgmr.msra.gmra.mxu1 %v1947_v46 }
 0x2bc   :  { %v2025_v29 = vpop.f32.mrf.mxu1 }
 0x2bd   :  { %v2026_v30 = vadd.f32 %v3252_v28, %v2025_v29 }
 0x2bf   :  { %3266 = vtanh.f32 %v2026_v30  ;;  %v3019_v33 = vmul.f32 -1.442695, %v2026_v30 }
 0x2c1   :  { %3268 = vpow2.f32 %v3019_v33 }
 0x2c4   :  { %v2027_v51 = vpop.f32.mrf.mxu1 }
 0x2c5   :  { %v3267_v31 = vpop.eup %3266 }
 0x2c6   :  { %2050 = vrot.lane.b32.xlu0 %v3267_v31, %s3274_s24 }
 0x2c7   :  { %v3269_v32 = vpop.eup %3268 }
 0x2c8   :  { %v2032_v26 = vadd.f32 1.0, %v3269_v32 }
 0x2ca   :  { %3270 = vrcp.f32 %v2032_v26  ;;  %v2044_v38 = vand.u32 2147483648, %v2032_v26  ;;  %vm2038_vm11 = vweird.f32 %v2032_v26  ;;  %v2042_v41 = vand.u32 2147483647, %v2032_v26 }
 0x2cc   :  { %v2045_v43 = vor.u32 1.1754944e-38, %v2044_v38  ;;  %vm2043_vm13 = vcmp.eq.f32.partialorder %v2042_v41, 8.507059e+37 }
 0x2d0   :  { %v3271_v34 = vpop.eup %3270 }
 0x2d1   :  { %v2034_v35 = vmul.f32 %v3271_v34, %v2032_v26  ;;  %vm2039_vm10 = vweird.f32 %v3271_v34 }
 0x2d2   :  { %vm2040_vm12 = vmor %vm2038_vm11, %vm2039_vm10 }
 0x2d3   :  { %v2035_v23 = vsub.f32 1.0, %v2034_v35 }
 0x2d5   :  { %v2036_v36 = vmul.f32 %v3271_v34, %v2035_v23 }
 0x2d7   :  { %v2037_v37 = vadd.f32 %v3271_v34, %v2036_v36 }
 0x2d9   :  { %v2041_v42 = vsel %vm2040_vm12, %v3271_v34, %v2037_v37 }
 0x2da   :  { %v2046_v48 = vsel %vm2043_vm13, %v2045_v43, %v2041_v42 }
 0x338   :  { %v2051_v47 = vpop.permute.xlu0 %2050 }
 0x339   :  { %v2053_v0 = vmul.f32 %v2051_v47, %v2046_v48 }
 0x33b   :  { %3272 = vtanh.f32 %v2053_v0 }
 0x341   :  { %v3273_v62 = vpop.eup %3272 }
 0x342   :  { %2056 = vrot.lane.b32.xlu0 %v3273_v62, %s3275_s10 }
 0x3b4   :  { %v2057_v52 = vpop.permute.xlu0 %2056 }
 0x3b5   :  { %v2059_v54 = vmul.f32 %v2057_v52, %v2046_v48 }
 0x3b7   :  { %v2060_v55 = vmax.f32 %v2059_v54, 0.0 }
 0x3b9   :  { %2068 = vrot.lane.b32.xlu1 %v2060_v55, %s3276_s27 }
 0x42b   :  { %v2069_v56 = vpop.permute.xlu1 %2068 }
 0x42c   :  { %3020 = vmatmul.msk.f32.vlgmr.msrb.gmra.mxu0 %vm1326_vm1, %v2069_v56 }
 0x4a9   :  { %v2089_v58 = vpop.f32.mrf.mxu0 }
 0x4aa   :  { %v2090_v59 = vadd.f32 %v3253_v53, %v2089_v58 }
 0x4ac   :  { %2093 = vst.msk [vmem:[%s4847_s13] sm:$0xff] %vm2092_vm14, %v2090_v59 }

</bundles_post_ra>
